<compile_context>
chip_gen: v7x
topology: tpu7x:2x2x1
jax: 0.10.0
libtpu: 0.0.40
codegen_flags: <defaults>
</compile_context>

<pallas_src>
import functools

import numpy as np
import jax
import jax.numpy as jnp
from jax.experimental import pallas as pl
from jax.experimental.pallas import tpu as pltpu


# --------------------- stride-phase tap tables (k=4,s=2,p=1) ---------------- #
# Layer 1: output row oh = 2*m + qh reads input row ih = m + (roff - 1) with
# kernel row kh, where (roff, qh, kh) runs over:
_L1_TAPS = ((0, 0, 3), (1, 0, 1), (1, 1, 2), (2, 1, 0))

# Layer 2 (consumes the phase-planar layer-1 output): final row OH = 4*u + sh
# reads layer-1 phase plane qh at plane row m = u + (uoff - 1) with kernel row
# kh; for each sh the (kh, qh, uoff) taps are:
_L2_TAPS = {
    0: ((1, 0, 1), (3, 1, 0)),
    1: ((0, 1, 1), (2, 0, 1)),
    2: ((1, 1, 1), (3, 0, 1)),
    3: ((0, 0, 2), (2, 1, 1)),
}


def _build_l1_weights(w1, b1):
    """w1: (Cin, C1, 4, 4) PyTorch ConvTranspose2d layout -> (9, Cin, 4*C1)."""
    cin, c1 = w1.shape[0], w1.shape[1]
    s1 = np.zeros((3, 3, 4, 4, 4), np.float32)        # [roff, coff, phase, kh, kw]
    for (roff, qh, kh) in _L1_TAPS:
        for (coff, qw, kw) in _L1_TAPS:
            s1[roff, coff, qh * 2 + qw, kh, kw] = 1.0
    # w1m[t = roff*3+coff, ci, phase*C1 + co]
    w1m = jnp.einsum("abpkl,iokl->abipo", s1, w1).reshape(9, cin, 4 * c1)
    b1m = jnp.tile(b1, 4).reshape(1, 4 * c1)           # col = phase*C1 + co
    return w1m, b1m


def _build_l2_weights(w2, b2):
    """w2: (C1, C2, 4, 4) -> (9, 4*C1, 16*C2)."""
    c1, c2 = w2.shape[0], w2.shape[1]
    s2 = np.zeros((3, 3, 4, 16, 4, 4), np.float32)     # [uoff, voff, phase1, sh*4+sw, kh, kw]
    for sh, htaps in _L2_TAPS.items():
        for (kh, qh, uoff) in htaps:
            for sw, wtaps in _L2_TAPS.items():
                for (kw, qw, voff) in wtaps:
                    s2[uoff, voff, qh * 2 + qw, sh * 4 + sw, kh, kw] = 1.0
    # w2m[t = uoff*3+voff, phase1*C1 + c1, co2*16 + sh*4 + sw]
    w2m = jnp.einsum("abpskl,iokl->abpios", s2, w2).reshape(9, 4 * c1, 16 * c2)
    b2m = jnp.repeat(b2, 16).reshape(1, 16 * c2)        # col = co2*16 + sh*4 + sw
    return w2m, b2m


# ------------------------------ fused kernel ------------------------------- #

def _decoder_kernel(xp_ref, w1m_ref, b1m_ref, w2m_ref, b2m_ref, out_ref, mid_ref,
                    *, bsz, h, w, cin, c1, c2):
    """Whole decoder for one batch chunk of `bsz` images.

    xp_ref : (bsz, h+2, w+2, cin)   channels-last, 1-padded input
    w1m_ref: (9, cin, 4*c1)         phase-decomposed layer-1 weights (VMEM)
    b1m_ref: (1, 4*c1)
    w2m_ref: (9, 4*c1, 16*c2)       phase-decomposed layer-2 weights (VMEM)
    b2m_ref: (1, 16*c2)
    out_ref: (bsz, c2, h, 4, w, 4)  row-major == final NCHW (bsz, c2, 4h, 4w)
    mid_ref: (bsz, h+2, w+2, 4*c1)  VMEM scratch: padded phase-planar layer-1 out
    """
    f32 = jnp.float32
    p1 = 4 * c1
    p2 = 16 * c2
    rows = bsz * h * w

    # ---- layer 1: ConvTranspose2d(cin->c1, 4, 2, 1) + bias + ReLU  (MXU) ----
    acc1 = jnp.zeros((rows, p1), f32)
    for t in range(9):
        ro, co_ = t // 3, t % 3
        lhs = xp_ref[:, ro:ro + h, co_:co_ + w, :].reshape(rows, cin)
        acc1 = acc1 + jnp.dot(lhs, w1m_ref[t], preferred_element_type=f32)
    y1 = jnp.maximum(acc1 + b1m_ref[...], 0.0)

    # Zero only the 1-pixel halo; the interior is fully overwritten each step.
    mid_ref[:, 0, :, :] = jnp.zeros((bsz, w + 2, p1), f32)
    mid_ref[:, h + 1, :, :] = jnp.zeros((bsz, w + 2, p1), f32)
    mid_ref[:, :, 0, :] = jnp.zeros((bsz, h + 2, p1), f32)
    mid_ref[:, :, w + 1, :] = jnp.zeros((bsz, h + 2, p1), f32)
    mid_ref[:, 1:1 + h, 1:1 + w, :] = y1.reshape(bsz, h, w, p1)

    # ---- layer 2: ConvTranspose2d(c1->c2, 4, 2, 1) + bias + Tanh   (MXU) ----
    acc2 = jnp.zeros((rows, p2), f32)
    for t in range(9):
        ro, co_ = t // 3, t % 3
        lhs = mid_ref[:, ro:ro + h, co_:co_ + w, :].reshape(rows, p1)
        acc2 = acc2 + jnp.dot(lhs, w2m_ref[t], preferred_element_type=f32)
    y2 = jnp.tanh(acc2 + b2m_ref[...])

    # Direct store in final NCHW element order (wrapper reshape is free).
    for oc in range(c2):
        for sh in range(4):
            col0 = oc * 16 + sh * 4
            out_ref[:, oc, :, sh, :, :] = y2[:, col0:col0 + 4].reshape(bsz, h, w, 4)


# ------------------------------ Decoder model ------------------------------ #

DECODER_CONFIG = {
    "id": 0,
    "decoder": [
        {"type": "deconv", "param": {"in_channels": 8, "out_channels": 4,
                                     "kernel_size": 4, "stride": 2, "padding": 1}},
        {"type": "relu"},
        {"type": "deconv", "param": {"in_channels": 4, "out_channels": 1,
                                     "kernel_size": 4, "stride": 2, "padding": 1}},
        {"type": "tanh"},
    ],
}
# TODO(synk): batchnorm / dropout / leaky_relu / linear / tt_deconv branches of
# Decoder.build (and Decoder.load's torch.load) are not exercised by this config
# and are not implemented here.

_EXPECTED_TYPES = ("deconv", "relu", "deconv", "tanh")


def init_decoder_params(key, config):
    params = []
    for layer in config["decoder"]:
        if layer["type"] == "deconv":
            p = layer["param"]
            cin, cout, k = p["in_channels"], p["out_channels"], p["kernel_size"]
            key, kw, kb = jax.random.split(key, 3)
            # PyTorch ConvTranspose2d weight layout: (Cin, Cout, kH, kW)
            wgt = 0.1 * jax.random.normal(kw, (cin, cout, k, k), jnp.float32)
            b = 0.1 * jax.random.normal(kb, (cout,), jnp.float32)
            params.append((wgt, b))
    return params


@jax.jit
def _decoder_fused(params, x):
    (w1, b1), (w2, b2) = params
    n, cin, h, w = x.shape
    c1 = w1.shape[1]
    c2 = w2.shape[1]

    w1m, b1m = _build_l1_weights(w1, b1)
    w2m, b2m = _build_l2_weights(w2, b2)

    # Channels-last, 1-padded input (one tiny XLA fusion; no dilation scatter).
    xp = jnp.pad(jnp.transpose(x, (0, 2, 3, 1)).astype(jnp.float32),
                 ((0, 0), (1, 1), (1, 1), (0, 0)))

    g = 2 if n >= 2 else 1          # 2 parallel steps -> both v7x TensorCores busy
    bsz = -(-n // g)                # batch folded per step for single-TC v5e/v6e
    npad = g * bsz
    if npad != n:
        xp = jnp.pad(xp, ((0, npad - n), (0, 0), (0, 0), (0, 0)))

    kernel = functools.partial(_decoder_kernel, bsz=bsz, h=h, w=w,
                               cin=cin, c1=c1, c2=c2)
    out = pl.pallas_call(
        kernel,
        out_shape=jax.ShapeDtypeStruct((npad, c2, h, 4, w, 4), jnp.float32),
        grid=(g,),
        in_specs=[
            pl.BlockSpec((bsz, h + 2, w + 2, cin), lambda i: (i, 0, 0, 0)),
            pl.BlockSpec((9, cin, 4 * c1), lambda i: (0, 0, 0)),
            pl.BlockSpec((1, 4 * c1), lambda i: (0, 0)),
            pl.BlockSpec((9, 4 * c1, 16 * c2), lambda i: (0, 0, 0)),
            pl.BlockSpec((1, 16 * c2), lambda i: (0, 0)),
        ],
        out_specs=pl.BlockSpec((bsz, c2, h, 4, w, 4),
                               lambda i: (i, 0, 0, 0, 0, 0)),
        scratch_shapes=[pltpu.VMEM((bsz, h + 2, w + 2, 4 * c1), jnp.float32)],
        compiler_params=pltpu.CompilerParams(dimension_semantics=("parallel",)),
    )(xp, w1m, b1m, w2m, b2m)

    # (npad, c2, h, 4, w, 4) row-major is already NCHW order -> free reshape.
    return out.reshape(npad, c2, 4 * h, 4 * w)[:n]


def decoder_forward_pallas(params, config, x):
    types = tuple(layer["type"] for layer in config["decoder"])
    if types != _EXPECTED_TYPES:
        raise ValueError("Unsupported layer type supplied.")
    for layer in config["decoder"]:
        if layer["type"] == "deconv":
            p = layer["param"]
            if (p["kernel_size"], p["stride"], p["padding"]) != (4, 2, 1):
                raise ValueError("Kernel supports ConvTranspose2d(k=4, s=2, p=1) only.")
    return _decoder_fused(params, x)


# --------------------------- pure-JAX reference ---------------------------- #

def conv_transpose2d_ref(x, w, bias, stride, padding):
    Cin, Cout, k, _ = w.shape
    w_conv = w[:, :, ::-1, ::-1].transpose(1, 0, 2, 3)  # (Cout, Cin, k, k)
    pad = k - 1 - padding
    y = jax.lax.conv_general_dilated(
        x, w_conv, window_strides=(1, 1),
        padding=[(pad, pad), (pad, pad)],
        lhs_dilation=(stride, stride),
        dimension_numbers=("NCHW", "OIHW", "NCHW"))
    return y + bias.reshape(1, Cout, 1, 1)


def decoder_forward_ref(params, config, x):
    deconv_idx = 0
    out = x
    for layer in config["decoder"]:
        if layer["type"] == "deconv":
            w, b = params[deconv_idx]
            deconv_idx += 1
            p = layer["param"]
            out = conv_transpose2d_ref(out, w, b, p["stride"], p["padding"])
        elif layer["type"] == "relu":
            out = jnp.maximum(out, 0.0)
        elif layer["type"] == "tanh":
            out = jnp.tanh(out)
    return out


# ----------------------------------- main ----------------------------------- #

if __name__ == "__main__":
    key = jax.random.PRNGKey(0)
    key, kx = jax.random.split(key)
    x = jax.random.normal(kx, (2, 8, 8, 8), jnp.float32)   # NCHW latent input

    params = init_decoder_params(key, DECODER_CONFIG)

    out = decoder_forward_pallas(params, DECODER_CONFIG, x)
    out = jax.block_until_ready(out)

    ref = decoder_forward_ref(params, DECODER_CONFIG, x)
    assert out.shape == (2, 1, 32, 32), out.shape
    assert jnp.allclose(out, ref, atol=1e-4, rtol=1e-4), "mismatch vs reference"

    print("KERNEL_OK")
</pallas_src>

<mosaic_0001>
module attributes {stable_mosaic.version = 11 : i64} {
  func.func @_decoder_kernel(%arg0: i32, %arg1: memref<1x10x10x8xf32, #tpu.memory_space<vmem>>, %arg2: memref<9x8x16xf32, #tpu.memory_space<vmem>>, %arg3: memref<1x16xf32, #tpu.memory_space<vmem>>, %arg4: memref<9x16x16xf32, #tpu.memory_space<vmem>>, %arg5: memref<1x16xf32, #tpu.memory_space<vmem>>, %arg6: memref<1x1x8x4x8x4xf32, #tpu.memory_space<vmem>>, %arg7: memref<1x10x10x16xf32, #tpu.memory_space<vmem>>) attributes {dimension_semantics = [#tpu.dimension_semantics<parallel>], iteration_bounds = array<i64: 2>, scalar_prefetch = 0 : i64, scratch_operands = 1 : i64, tpu.core_type = #tpu.core_type<tc>, window_params = [{transform_indices = @transform_0, window_bounds = array<i64: 1, 10, 10, 8>}, {pipeline_mode = #tpu.pipeline_mode<synchronous>, transform_indices = @transform_1, window_bounds = array<i64: 9, 8, 16>}, {pipeline_mode = #tpu.pipeline_mode<synchronous>, transform_indices = @transform_2, window_bounds = array<i64: 1, 16>}, {pipeline_mode = #tpu.pipeline_mode<synchronous>, transform_indices = @transform_3, window_bounds = array<i64: 9, 16, 16>}, {pipeline_mode = #tpu.pipeline_mode<synchronous>, transform_indices = @transform_4, window_bounds = array<i64: 1, 16>}, {transform_indices = @transform_5, window_bounds = array<i64: 1, 1, 8, 4, 8, 4>}]} {
    %cst = arith.constant 0.000000e+00 : f32
    %0 = vector.broadcast %cst : f32 to vector<64x16xf32>
    %c0 = arith.constant 0 : index
    %c0_0 = arith.constant 0 : index
    %c0_1 = arith.constant 0 : index
    %c0_2 = arith.constant 0 : index
    %1 = vector.load %arg1[%c0, %c0_0, %c0_1, %c0_2] : memref<1x10x10x8xf32, #tpu.memory_space<vmem>>, vector<1x8x8x8xf32>
    %2 = vector.shape_cast %1 : vector<1x8x8x8xf32> to vector<64x8xf32>
    %c0_3 = arith.constant 0 : index
    %c0_4 = arith.constant 0 : index
    %c0_5 = arith.constant 0 : index
    %3 = vector.load %arg2[%c0_3, %c0_4, %c0_5] : memref<9x8x16xf32, #tpu.memory_space<vmem>>, vector<1x8x16xf32>
    %4 = vector.shape_cast %3 : vector<1x8x16xf32> to vector<8x16xf32>
    %cst_6 = arith.constant dense<0.000000e+00> : vector<64x16xf32>
    %5 = tpu.matmul %2, %4, %cst_6 {dimension_numbers = #tpu.dot_dimension_numbers<[1], [0], [0], [1], [0, 0, 1, 1], [], []>} : vector<64x8xf32>, vector<8x16xf32>, vector<64x16xf32> -> vector<64x16xf32>
    %6 = arith.addf %0, %5 : vector<64x16xf32>
    %c0_7 = arith.constant 0 : index
    %c0_8 = arith.constant 0 : index
    %c1 = arith.constant 1 : index
    %c0_9 = arith.constant 0 : index
    %7 = vector.load %arg1[%c0_7, %c0_8, %c1, %c0_9] : memref<1x10x10x8xf32, #tpu.memory_space<vmem>>, vector<1x8x8x8xf32>
    %8 = vector.shape_cast %7 : vector<1x8x8x8xf32> to vector<64x8xf32>
    %c1_10 = arith.constant 1 : index
    %c0_11 = arith.constant 0 : index
    %c0_12 = arith.constant 0 : index
    %9 = vector.load %arg2[%c1_10, %c0_11, %c0_12] : memref<9x8x16xf32, #tpu.memory_space<vmem>>, vector<1x8x16xf32>
    %10 = vector.shape_cast %9 : vector<1x8x16xf32> to vector<8x16xf32>
    %cst_13 = arith.constant dense<0.000000e+00> : vector<64x16xf32>
    %11 = tpu.matmul %8, %10, %cst_13 {dimension_numbers = #tpu.dot_dimension_numbers<[1], [0], [0], [1], [0, 0, 1, 1], [], []>} : vector<64x8xf32>, vector<8x16xf32>, vector<64x16xf32> -> vector<64x16xf32>
    %12 = arith.addf %6, %11 : vector<64x16xf32>
    %c0_14 = arith.constant 0 : index
    %c0_15 = arith.constant 0 : index
    %c2 = arith.constant 2 : index
    %c0_16 = arith.constant 0 : index
    %13 = vector.load %arg1[%c0_14, %c0_15, %c2, %c0_16] : memref<1x10x10x8xf32, #tpu.memory_space<vmem>>, vector<1x8x8x8xf32>
    %14 = vector.shape_cast %13 : vector<1x8x8x8xf32> to vector<64x8xf32>
    %c2_17 = arith.constant 2 : index
    %c0_18 = arith.constant 0 : index
    %c0_19 = arith.constant 0 : index
    %15 = vector.load %arg2[%c2_17, %c0_18, %c0_19] : memref<9x8x16xf32, #tpu.memory_space<vmem>>, vector<1x8x16xf32>
    %16 = vector.shape_cast %15 : vector<1x8x16xf32> to vector<8x16xf32>
    %cst_20 = arith.constant dense<0.000000e+00> : vector<64x16xf32>
    %17 = tpu.matmul %14, %16, %cst_20 {dimension_numbers = #tpu.dot_dimension_numbers<[1], [0], [0], [1], [0, 0, 1, 1], [], []>} : vector<64x8xf32>, vector<8x16xf32>, vector<64x16xf32> -> vector<64x16xf32>
    %18 = arith.addf %12, %17 : vector<64x16xf32>
    %c0_21 = arith.constant 0 : index
    %c1_22 = arith.constant 1 : index
    %c0_23 = arith.constant 0 : index
    %c0_24 = arith.constant 0 : index
    %19 = vector.load %arg1[%c0_21, %c1_22, %c0_23, %c0_24] : memref<1x10x10x8xf32, #tpu.memory_space<vmem>>, vector<1x8x8x8xf32>
    %20 = vector.shape_cast %19 : vector<1x8x8x8xf32> to vector<64x8xf32>
    %c3 = arith.constant 3 : index
    %c0_25 = arith.constant 0 : index
    %c0_26 = arith.constant 0 : index
    %21 = vector.load %arg2[%c3, %c0_25, %c0_26] : memref<9x8x16xf32, #tpu.memory_space<vmem>>, vector<1x8x16xf32>
    %22 = vector.shape_cast %21 : vector<1x8x16xf32> to vector<8x16xf32>
    %cst_27 = arith.constant dense<0.000000e+00> : vector<64x16xf32>
    %23 = tpu.matmul %20, %22, %cst_27 {dimension_numbers = #tpu.dot_dimension_numbers<[1], [0], [0], [1], [0, 0, 1, 1], [], []>} : vector<64x8xf32>, vector<8x16xf32>, vector<64x16xf32> -> vector<64x16xf32>
    %24 = arith.addf %18, %23 : vector<64x16xf32>
    %c0_28 = arith.constant 0 : index
    %c1_29 = arith.constant 1 : index
    %c1_30 = arith.constant 1 : index
    %c0_31 = arith.constant 0 : index
    %25 = vector.load %arg1[%c0_28, %c1_29, %c1_30, %c0_31] : memref<1x10x10x8xf32, #tpu.memory_space<vmem>>, vector<1x8x8x8xf32>
    %26 = vector.shape_cast %25 : vector<1x8x8x8xf32> to vector<64x8xf32>
    %c4 = arith.constant 4 : index
    %c0_32 = arith.constant 0 : index
    %c0_33 = arith.constant 0 : index
    %27 = vector.load %arg2[%c4, %c0_32, %c0_33] : memref<9x8x16xf32, #tpu.memory_space<vmem>>, vector<1x8x16xf32>
    %28 = vector.shape_cast %27 : vector<1x8x16xf32> to vector<8x16xf32>
    %cst_34 = arith.constant dense<0.000000e+00> : vector<64x16xf32>
    %29 = tpu.matmul %26, %28, %cst_34 {dimension_numbers = #tpu.dot_dimension_numbers<[1], [0], [0], [1], [0, 0, 1, 1], [], []>} : vector<64x8xf32>, vector<8x16xf32>, vector<64x16xf32> -> vector<64x16xf32>
    %30 = arith.addf %24, %29 : vector<64x16xf32>
    %c0_35 = arith.constant 0 : index
    %c1_36 = arith.constant 1 : index
    %c2_37 = arith.constant 2 : index
    %c0_38 = arith.constant 0 : index
    %31 = vector.load %arg1[%c0_35, %c1_36, %c2_37, %c0_38] : memref<1x10x10x8xf32, #tpu.memory_space<vmem>>, vector<1x8x8x8xf32>
    %32 = vector.shape_cast %31 : vector<1x8x8x8xf32> to vector<64x8xf32>
    %c5 = arith.constant 5 : index
    %c0_39 = arith.constant 0 : index
    %c0_40 = arith.constant 0 : index
    %33 = vector.load %arg2[%c5, %c0_39, %c0_40] : memref<9x8x16xf32, #tpu.memory_space<vmem>>, vector<1x8x16xf32>
    %34 = vector.shape_cast %33 : vector<1x8x16xf32> to vector<8x16xf32>
    %cst_41 = arith.constant dense<0.000000e+00> : vector<64x16xf32>
    %35 = tpu.matmul %32, %34, %cst_41 {dimension_numbers = #tpu.dot_dimension_numbers<[1], [0], [0], [1], [0, 0, 1, 1], [], []>} : vector<64x8xf32>, vector<8x16xf32>, vector<64x16xf32> -> vector<64x16xf32>
    %36 = arith.addf %30, %35 : vector<64x16xf32>
    %c0_42 = arith.constant 0 : index
    %c2_43 = arith.constant 2 : index
    %c0_44 = arith.constant 0 : index
    %c0_45 = arith.constant 0 : index
    %37 = vector.load %arg1[%c0_42, %c2_43, %c0_44, %c0_45] : memref<1x10x10x8xf32, #tpu.memory_space<vmem>>, vector<1x8x8x8xf32>
    %38 = vector.shape_cast %37 : vector<1x8x8x8xf32> to vector<64x8xf32>
    %c6 = arith.constant 6 : index
    %c0_46 = arith.constant 0 : index
    %c0_47 = arith.constant 0 : index
    %39 = vector.load %arg2[%c6, %c0_46, %c0_47] : memref<9x8x16xf32, #tpu.memory_space<vmem>>, vector<1x8x16xf32>
    %40 = vector.shape_cast %39 : vector<1x8x16xf32> to vector<8x16xf32>
    %cst_48 = arith.constant dense<0.000000e+00> : vector<64x16xf32>
    %41 = tpu.matmul %38, %40, %cst_48 {dimension_numbers = #tpu.dot_dimension_numbers<[1], [0], [0], [1], [0, 0, 1, 1], [], []>} : vector<64x8xf32>, vector<8x16xf32>, vector<64x16xf32> -> vector<64x16xf32>
    %42 = arith.addf %36, %41 : vector<64x16xf32>
    %c0_49 = arith.constant 0 : index
    %c2_50 = arith.constant 2 : index
    %c1_51 = arith.constant 1 : index
    %c0_52 = arith.constant 0 : index
    %43 = vector.load %arg1[%c0_49, %c2_50, %c1_51, %c0_52] : memref<1x10x10x8xf32, #tpu.memory_space<vmem>>, vector<1x8x8x8xf32>
    %44 = vector.shape_cast %43 : vector<1x8x8x8xf32> to vector<64x8xf32>
    %c7 = arith.constant 7 : index
    %c0_53 = arith.constant 0 : index
    %c0_54 = arith.constant 0 : index
    %45 = vector.load %arg2[%c7, %c0_53, %c0_54] : memref<9x8x16xf32, #tpu.memory_space<vmem>>, vector<1x8x16xf32>
    %46 = vector.shape_cast %45 : vector<1x8x16xf32> to vector<8x16xf32>
    %cst_55 = arith.constant dense<0.000000e+00> : vector<64x16xf32>
    %47 = tpu.matmul %44, %46, %cst_55 {dimension_numbers = #tpu.dot_dimension_numbers<[1], [0], [0], [1], [0, 0, 1, 1], [], []>} : vector<64x8xf32>, vector<8x16xf32>, vector<64x16xf32> -> vector<64x16xf32>
    %48 = arith.addf %42, %47 : vector<64x16xf32>
    %c0_56 = arith.constant 0 : index
    %c2_57 = arith.constant 2 : index
    %c2_58 = arith.constant 2 : index
    %c0_59 = arith.constant 0 : index
    %49 = vector.load %arg1[%c0_56, %c2_57, %c2_58, %c0_59] : memref<1x10x10x8xf32, #tpu.memory_space<vmem>>, vector<1x8x8x8xf32>
    %50 = vector.shape_cast %49 : vector<1x8x8x8xf32> to vector<64x8xf32>
    %c8 = arith.constant 8 : index
    %c0_60 = arith.constant 0 : index
    %c0_61 = arith.constant 0 : index
    %51 = vector.load %arg2[%c8, %c0_60, %c0_61] : memref<9x8x16xf32, #tpu.memory_space<vmem>>, vector<1x8x16xf32>
    %52 = vector.shape_cast %51 : vector<1x8x16xf32> to vector<8x16xf32>
    %cst_62 = arith.constant dense<0.000000e+00> : vector<64x16xf32>
    %53 = tpu.matmul %50, %52, %cst_62 {dimension_numbers = #tpu.dot_dimension_numbers<[1], [0], [0], [1], [0, 0, 1, 1], [], []>} : vector<64x8xf32>, vector<8x16xf32>, vector<64x16xf32> -> vector<64x16xf32>
    %54 = arith.addf %48, %53 : vector<64x16xf32>
    %c0_63 = arith.constant 0 : index
    %c0_64 = arith.constant 0 : index
    %55 = vector.load %arg3[%c0_63, %c0_64] : memref<1x16xf32, #tpu.memory_space<vmem>>, vector<1x16xf32>
    %56 = vector.broadcast %55 : vector<1x16xf32> to vector<64x16xf32>
    %57 = arith.addf %54, %56 : vector<64x16xf32>
    %cst_65 = arith.constant 0.000000e+00 : f32
    %58 = vector.broadcast %cst_65 : f32 to vector<64x16xf32>
    %59 = arith.maximumf %57, %58 : vector<64x16xf32>
    %cst_66 = arith.constant 0.000000e+00 : f32
    %60 = vector.broadcast %cst_66 : f32 to vector<1x10x16xf32>
    %c0_67 = arith.constant 0 : index
    %c0_68 = arith.constant 0 : index
    %c0_69 = arith.constant 0 : index
    %c0_70 = arith.constant 0 : index
    %61 = vector.load %arg7[%c0_67, %c0_68, %c0_69, %c0_70] : memref<1x10x10x16xf32, #tpu.memory_space<vmem>>, vector<1x1x10x16xf32>
    %62 = vector.shape_cast %61 : vector<1x1x10x16xf32> to vector<1x10x16xf32>
    %63 = vector.shape_cast %60 : vector<1x10x16xf32> to vector<1x1x10x16xf32>
    tpu.vector_store %arg7[%c0_67, %c0_68, %c0_69, %c0_70], %63 {strides = array<i32>} : memref<1x10x10x16xf32, #tpu.memory_space<vmem>>, vector<1x1x10x16xf32>,
    %cst_71 = arith.constant 0.000000e+00 : f32
    %64 = vector.broadcast %cst_71 : f32 to vector<1x10x16xf32>
    %c0_72 = arith.constant 0 : index
    %c9 = arith.constant 9 : index
    %c0_73 = arith.constant 0 : index
    %c0_74 = arith.constant 0 : index
    %65 = vector.load %arg7[%c0_72, %c9, %c0_73, %c0_74] : memref<1x10x10x16xf32, #tpu.memory_space<vmem>>, vector<1x1x10x16xf32>
    %66 = vector.shape_cast %65 : vector<1x1x10x16xf32> to vector<1x10x16xf32>
    %67 = vector.shape_cast %64 : vector<1x10x16xf32> to vector<1x1x10x16xf32>
    tpu.vector_store %arg7[%c0_72, %c9, %c0_73, %c0_74], %67 {strides = array<i32>} : memref<1x10x10x16xf32, #tpu.memory_space<vmem>>, vector<1x1x10x16xf32>,
    %cst_75 = arith.constant 0.000000e+00 : f32
    %68 = vector.broadcast %cst_75 : f32 to vector<1x10x16xf32>
    %c0_76 = arith.constant 0 : index
    %c0_77 = arith.constant 0 : index
    %c0_78 = arith.constant 0 : index
    %c0_79 = arith.constant 0 : index
    %69 = vector.load %arg7[%c0_76, %c0_77, %c0_78, %c0_79] : memref<1x10x10x16xf32, #tpu.memory_space<vmem>>, vector<1x10x1x16xf32>
    %70 = vector.shape_cast %69 : vector<1x10x1x16xf32> to vector<1x10x16xf32>
    %71 = vector.shape_cast %68 : vector<1x10x16xf32> to vector<1x10x1x16xf32>
    tpu.vector_store %arg7[%c0_76, %c0_77, %c0_78, %c0_79], %71 {strides = array<i32>} : memref<1x10x10x16xf32, #tpu.memory_space<vmem>>, vector<1x10x1x16xf32>,
    %cst_80 = arith.constant 0.000000e+00 : f32
    %72 = vector.broadcast %cst_80 : f32 to vector<1x10x16xf32>
    %c0_81 = arith.constant 0 : index
    %c0_82 = arith.constant 0 : index
    %c9_83 = arith.constant 9 : index
    %c0_84 = arith.constant 0 : index
    %73 = vector.load %arg7[%c0_81, %c0_82, %c9_83, %c0_84] : memref<1x10x10x16xf32, #tpu.memory_space<vmem>>, vector<1x10x1x16xf32>
    %74 = vector.shape_cast %73 : vector<1x10x1x16xf32> to vector<1x10x16xf32>
    %75 = vector.shape_cast %72 : vector<1x10x16xf32> to vector<1x10x1x16xf32>
    tpu.vector_store %arg7[%c0_81, %c0_82, %c9_83, %c0_84], %75 {strides = array<i32>} : memref<1x10x10x16xf32, #tpu.memory_space<vmem>>, vector<1x10x1x16xf32>,
    %76 = vector.shape_cast %59 : vector<64x16xf32> to vector<1x8x8x16xf32>
    %c0_85 = arith.constant 0 : index
    %c1_86 = arith.constant 1 : index
    %c1_87 = arith.constant 1 : index
    %c0_88 = arith.constant 0 : index
    %77 = vector.load %arg7[%c0_85, %c1_86, %c1_87, %c0_88] : memref<1x10x10x16xf32, #tpu.memory_space<vmem>>, vector<1x8x8x16xf32>
    tpu.vector_store %arg7[%c0_85, %c1_86, %c1_87, %c0_88], %76 {strides = array<i32>} : memref<1x10x10x16xf32, #tpu.memory_space<vmem>>, vector<1x8x8x16xf32>,
    %cst_89 = arith.constant 0.000000e+00 : f32
    %78 = vector.broadcast %cst_89 : f32 to vector<64x16xf32>
    %c0_90 = arith.constant 0 : index
    %c0_91 = arith.constant 0 : index
    %c0_92 = arith.constant 0 : index
    %c0_93 = arith.constant 0 : index
    %79 = vector.load %arg7[%c0_90, %c0_91, %c0_92, %c0_93] : memref<1x10x10x16xf32, #tpu.memory_space<vmem>>, vector<1x8x8x16xf32>
    %80 = vector.shape_cast %79 : vector<1x8x8x16xf32> to vector<64x16xf32>
    %c0_94 = arith.constant 0 : index
    %c0_95 = arith.constant 0 : index
    %c0_96 = arith.constant 0 : index
    %81 = vector.load %arg4[%c0_94, %c0_95, %c0_96] : memref<9x16x16xf32, #tpu.memory_space<vmem>>, vector<1x16x16xf32>
    %82 = vector.shape_cast %81 : vector<1x16x16xf32> to vector<16x16xf32>
    %cst_97 = arith.constant dense<0.000000e+00> : vector<64x16xf32>
    %83 = tpu.matmul %80, %82, %cst_97 {dimension_numbers = #tpu.dot_dimension_numbers<[1], [0], [0], [1], [0, 0, 1, 1], [], []>} : vector<64x16xf32>, vector<16x16xf32>, vector<64x16xf32> -> vector<64x16xf32>
    %84 = arith.addf %78, %83 : vector<64x16xf32>
    %c0_98 = arith.constant 0 : index
    %c0_99 = arith.constant 0 : index
    %c1_100 = arith.constant 1 : index
    %c0_101 = arith.constant 0 : index
    %85 = vector.load %arg7[%c0_98, %c0_99, %c1_100, %c0_101] : memref<1x10x10x16xf32, #tpu.memory_space<vmem>>, vector<1x8x8x16xf32>
    %86 = vector.shape_cast %85 : vector<1x8x8x16xf32> to vector<64x16xf32>
    %c1_102 = arith.constant 1 : index
    %c0_103 = arith.constant 0 : index
    %c0_104 = arith.constant 0 : index
    %87 = vector.load %arg4[%c1_102, %c0_103, %c0_104] : memref<9x16x16xf32, #tpu.memory_space<vmem>>, vector<1x16x16xf32>
    %88 = vector.shape_cast %87 : vector<1x16x16xf32> to vector<16x16xf32>
    %cst_105 = arith.constant dense<0.000000e+00> : vector<64x16xf32>
    %89 = tpu.matmul %86, %88, %cst_105 {dimension_numbers = #tpu.dot_dimension_numbers<[1], [0], [0], [1], [0, 0, 1, 1], [], []>} : vector<64x16xf32>, vector<16x16xf32>, vector<64x16xf32> -> vector<64x16xf32>
    %90 = arith.addf %84, %89 : vector<64x16xf32>
    %c0_106 = arith.constant 0 : index
    %c0_107 = arith.constant 0 : index
    %c2_108 = arith.constant 2 : index
    %c0_109 = arith.constant 0 : index
    %91 = vector.load %arg7[%c0_106, %c0_107, %c2_108, %c0_109] : memref<1x10x10x16xf32, #tpu.memory_space<vmem>>, vector<1x8x8x16xf32>
    %92 = vector.shape_cast %91 : vector<1x8x8x16xf32> to vector<64x16xf32>
    %c2_110 = arith.constant 2 : index
    %c0_111 = arith.constant 0 : index
    %c0_112 = arith.constant 0 : index
    %93 = vector.load %arg4[%c2_110, %c0_111, %c0_112] : memref<9x16x16xf32, #tpu.memory_space<vmem>>, vector<1x16x16xf32>
    %94 = vector.shape_cast %93 : vector<1x16x16xf32> to vector<16x16xf32>
    %cst_113 = arith.constant dense<0.000000e+00> : vector<64x16xf32>
    %95 = tpu.matmul %92, %94, %cst_113 {dimension_numbers = #tpu.dot_dimension_numbers<[1], [0], [0], [1], [0, 0, 1, 1], [], []>} : vector<64x16xf32>, vector<16x16xf32>, vector<64x16xf32> -> vector<64x16xf32>
    %96 = arith.addf %90, %95 : vector<64x16xf32>
    %c0_114 = arith.constant 0 : index
    %c1_115 = arith.constant 1 : index
    %c0_116 = arith.constant 0 : index
    %c0_117 = arith.constant 0 : index
    %97 = vector.load %arg7[%c0_114, %c1_115, %c0_116, %c0_117] : memref<1x10x10x16xf32, #tpu.memory_space<vmem>>, vector<1x8x8x16xf32>
    %98 = vector.shape_cast %97 : vector<1x8x8x16xf32> to vector<64x16xf32>
    %c3_118 = arith.constant 3 : index
    %c0_119 = arith.constant 0 : index
    %c0_120 = arith.constant 0 : index
    %99 = vector.load %arg4[%c3_118, %c0_119, %c0_120] : memref<9x16x16xf32, #tpu.memory_space<vmem>>, vector<1x16x16xf32>
    %100 = vector.shape_cast %99 : vector<1x16x16xf32> to vector<16x16xf32>
    %cst_121 = arith.constant dense<0.000000e+00> : vector<64x16xf32>
    %101 = tpu.matmul %98, %100, %cst_121 {dimension_numbers = #tpu.dot_dimension_numbers<[1], [0], [0], [1], [0, 0, 1, 1], [], []>} : vector<64x16xf32>, vector<16x16xf32>, vector<64x16xf32> -> vector<64x16xf32>
    %102 = arith.addf %96, %101 : vector<64x16xf32>
    %c0_122 = arith.constant 0 : index
    %c1_123 = arith.constant 1 : index
    %c1_124 = arith.constant 1 : index
    %c0_125 = arith.constant 0 : index
    %103 = vector.load %arg7[%c0_122, %c1_123, %c1_124, %c0_125] : memref<1x10x10x16xf32, #tpu.memory_space<vmem>>, vector<1x8x8x16xf32>
    %104 = vector.shape_cast %103 : vector<1x8x8x16xf32> to vector<64x16xf32>
    %c4_126 = arith.constant 4 : index
    %c0_127 = arith.constant 0 : index
    %c0_128 = arith.constant 0 : index
    %105 = vector.load %arg4[%c4_126, %c0_127, %c0_128] : memref<9x16x16xf32, #tpu.memory_space<vmem>>, vector<1x16x16xf32>
    %106 = vector.shape_cast %105 : vector<1x16x16xf32> to vector<16x16xf32>
    %cst_129 = arith.constant dense<0.000000e+00> : vector<64x16xf32>
    %107 = tpu.matmul %104, %106, %cst_129 {dimension_numbers = #tpu.dot_dimension_numbers<[1], [0], [0], [1], [0, 0, 1, 1], [], []>} : vector<64x16xf32>, vector<16x16xf32>, vector<64x16xf32> -> vector<64x16xf32>
    %108 = arith.addf %102, %107 : vector<64x16xf32>
    %c0_130 = arith.constant 0 : index
    %c1_131 = arith.constant 1 : index
    %c2_132 = arith.constant 2 : index
    %c0_133 = arith.constant 0 : index
    %109 = vector.load %arg7[%c0_130, %c1_131, %c2_132, %c0_133] : memref<1x10x10x16xf32, #tpu.memory_space<vmem>>, vector<1x8x8x16xf32>
    %110 = vector.shape_cast %109 : vector<1x8x8x16xf32> to vector<64x16xf32>
    %c5_134 = arith.constant 5 : index
    %c0_135 = arith.constant 0 : index
    %c0_136 = arith.constant 0 : index
    %111 = vector.load %arg4[%c5_134, %c0_135, %c0_136] : memref<9x16x16xf32, #tpu.memory_space<vmem>>, vector<1x16x16xf32>
    %112 = vector.shape_cast %111 : vector<1x16x16xf32> to vector<16x16xf32>
    %cst_137 = arith.constant dense<0.000000e+00> : vector<64x16xf32>
    %113 = tpu.matmul %110, %112, %cst_137 {dimension_numbers = #tpu.dot_dimension_numbers<[1], [0], [0], [1], [0, 0, 1, 1], [], []>} : vector<64x16xf32>, vector<16x16xf32>, vector<64x16xf32> -> vector<64x16xf32>
    %114 = arith.addf %108, %113 : vector<64x16xf32>
    %c0_138 = arith.constant 0 : index
    %c2_139 = arith.constant 2 : index
    %c0_140 = arith.constant 0 : index
    %c0_141 = arith.constant 0 : index
    %115 = vector.load %arg7[%c0_138, %c2_139, %c0_140, %c0_141] : memref<1x10x10x16xf32, #tpu.memory_space<vmem>>, vector<1x8x8x16xf32>
    %116 = vector.shape_cast %115 : vector<1x8x8x16xf32> to vector<64x16xf32>
    %c6_142 = arith.constant 6 : index
    %c0_143 = arith.constant 0 : index
    %c0_144 = arith.constant 0 : index
    %117 = vector.load %arg4[%c6_142, %c0_143, %c0_144] : memref<9x16x16xf32, #tpu.memory_space<vmem>>, vector<1x16x16xf32>
    %118 = vector.shape_cast %117 : vector<1x16x16xf32> to vector<16x16xf32>
    %cst_145 = arith.constant dense<0.000000e+00> : vector<64x16xf32>
    %119 = tpu.matmul %116, %118, %cst_145 {dimension_numbers = #tpu.dot_dimension_numbers<[1], [0], [0], [1], [0, 0, 1, 1], [], []>} : vector<64x16xf32>, vector<16x16xf32>, vector<64x16xf32> -> vector<64x16xf32>
    %120 = arith.addf %114, %119 : vector<64x16xf32>
    %c0_146 = arith.constant 0 : index
    %c2_147 = arith.constant 2 : index
    %c1_148 = arith.constant 1 : index
    %c0_149 = arith.constant 0 : index
    %121 = vector.load %arg7[%c0_146, %c2_147, %c1_148, %c0_149] : memref<1x10x10x16xf32, #tpu.memory_space<vmem>>, vector<1x8x8x16xf32>
    %122 = vector.shape_cast %121 : vector<1x8x8x16xf32> to vector<64x16xf32>
    %c7_150 = arith.constant 7 : index
    %c0_151 = arith.constant 0 : index
    %c0_152 = arith.constant 0 : index
    %123 = vector.load %arg4[%c7_150, %c0_151, %c0_152] : memref<9x16x16xf32, #tpu.memory_space<vmem>>, vector<1x16x16xf32>
    %124 = vector.shape_cast %123 : vector<1x16x16xf32> to vector<16x16xf32>
    %cst_153 = arith.constant dense<0.000000e+00> : vector<64x16xf32>
    %125 = tpu.matmul %122, %124, %cst_153 {dimension_numbers = #tpu.dot_dimension_numbers<[1], [0], [0], [1], [0, 0, 1, 1], [], []>} : vector<64x16xf32>, vector<16x16xf32>, vector<64x16xf32> -> vector<64x16xf32>
    %126 = arith.addf %120, %125 : vector<64x16xf32>
    %c0_154 = arith.constant 0 : index
    %c2_155 = arith.constant 2 : index
    %c2_156 = arith.constant 2 : index
    %c0_157 = arith.constant 0 : index
    %127 = vector.load %arg7[%c0_154, %c2_155, %c2_156, %c0_157] : memref<1x10x10x16xf32, #tpu.memory_space<vmem>>, vector<1x8x8x16xf32>
    %128 = vector.shape_cast %127 : vector<1x8x8x16xf32> to vector<64x16xf32>
    %c8_158 = arith.constant 8 : index
    %c0_159 = arith.constant 0 : index
    %c0_160 = arith.constant 0 : index
    %129 = vector.load %arg4[%c8_158, %c0_159, %c0_160] : memref<9x16x16xf32, #tpu.memory_space<vmem>>, vector<1x16x16xf32>
    %130 = vector.shape_cast %129 : vector<1x16x16xf32> to vector<16x16xf32>
    %cst_161 = arith.constant dense<0.000000e+00> : vector<64x16xf32>
    %131 = tpu.matmul %128, %130, %cst_161 {dimension_numbers = #tpu.dot_dimension_numbers<[1], [0], [0], [1], [0, 0, 1, 1], [], []>} : vector<64x16xf32>, vector<16x16xf32>, vector<64x16xf32> -> vector<64x16xf32>
    %132 = arith.addf %126, %131 : vector<64x16xf32>
    %c0_162 = arith.constant 0 : index
    %c0_163 = arith.constant 0 : index
    %133 = vector.load %arg5[%c0_162, %c0_163] : memref<1x16xf32, #tpu.memory_space<vmem>>, vector<1x16xf32>
    %134 = vector.broadcast %133 : vector<1x16xf32> to vector<64x16xf32>
    %135 = arith.addf %132, %134 : vector<64x16xf32>
    %136 = math.tanh %135 : vector<64x16xf32>
    %137 = vector.extract_strided_slice %136 {offsets = [0, 0], sizes = [64, 4], strides = [1, 1]} : vector<64x16xf32> to vector<64x4xf32>
    %138 = vector.shape_cast %137 : vector<64x4xf32> to vector<1x8x8x4xf32>
    %c0_164 = arith.constant 0 : index
    %c0_165 = arith.constant 0 : index
    %c0_166 = arith.constant 0 : index
    %c0_167 = arith.constant 0 : index
    %c0_168 = arith.constant 0 : index
    %c0_169 = arith.constant 0 : index
    %139 = vector.load %arg6[%c0_164, %c0_165, %c0_166, %c0_167, %c0_168, %c0_169] : memref<1x1x8x4x8x4xf32, #tpu.memory_space<vmem>>, vector<1x1x8x1x8x4xf32>
    %140 = vector.shape_cast %139 : vector<1x1x8x1x8x4xf32> to vector<1x8x8x4xf32>
    %141 = vector.shape_cast %138 : vector<1x8x8x4xf32> to vector<1x1x8x1x8x4xf32>
    tpu.vector_store %arg6[%c0_164, %c0_165, %c0_166, %c0_167, %c0_168, %c0_169], %141 {strides = array<i32>} : memref<1x1x8x4x8x4xf32, #tpu.memory_space<vmem>>, vector<1x1x8x1x8x4xf32>,
    %142 = vector.extract_strided_slice %136 {offsets = [0, 4], sizes = [64, 4], strides = [1, 1]} : vector<64x16xf32> to vector<64x4xf32>
    %143 = vector.shape_cast %142 : vector<64x4xf32> to vector<1x8x8x4xf32>
    %c0_170 = arith.constant 0 : index
    %c0_171 = arith.constant 0 : index
    %c0_172 = arith.constant 0 : index
    %c1_173 = arith.constant 1 : index
    %c0_174 = arith.constant 0 : index
    %c0_175 = arith.constant 0 : index
    %144 = vector.load %arg6[%c0_170, %c0_171, %c0_172, %c1_173, %c0_174, %c0_175] : memref<1x1x8x4x8x4xf32, #tpu.memory_space<vmem>>, vector<1x1x8x1x8x4xf32>
    %145 = vector.shape_cast %144 : vector<1x1x8x1x8x4xf32> to vector<1x8x8x4xf32>
    %146 = vector.shape_cast %143 : vector<1x8x8x4xf32> to vector<1x1x8x1x8x4xf32>
    tpu.vector_store %arg6[%c0_170, %c0_171, %c0_172, %c1_173, %c0_174, %c0_175], %146 {strides = array<i32>} : memref<1x1x8x4x8x4xf32, #tpu.memory_space<vmem>>, vector<1x1x8x1x8x4xf32>,
    %147 = vector.extract_strided_slice %136 {offsets = [0, 8], sizes = [64, 4], strides = [1, 1]} : vector<64x16xf32> to vector<64x4xf32>
    %148 = vector.shape_cast %147 : vector<64x4xf32> to vector<1x8x8x4xf32>
    %c0_176 = arith.constant 0 : index
    %c0_177 = arith.constant 0 : index
    %c0_178 = arith.constant 0 : index
    %c2_179 = arith.constant 2 : index
    %c0_180 = arith.constant 0 : index
    %c0_181 = arith.constant 0 : index
    %149 = vector.load %arg6[%c0_176, %c0_177, %c0_178, %c2_179, %c0_180, %c0_181] : memref<1x1x8x4x8x4xf32, #tpu.memory_space<vmem>>, vector<1x1x8x1x8x4xf32>
    %150 = vector.shape_cast %149 : vector<1x1x8x1x8x4xf32> to vector<1x8x8x4xf32>
    %151 = vector.shape_cast %148 : vector<1x8x8x4xf32> to vector<1x1x8x1x8x4xf32>
    tpu.vector_store %arg6[%c0_176, %c0_177, %c0_178, %c2_179, %c0_180, %c0_181], %151 {strides = array<i32>} : memref<1x1x8x4x8x4xf32, #tpu.memory_space<vmem>>, vector<1x1x8x1x8x4xf32>,
    %152 = vector.extract_strided_slice %136 {offsets = [0, 12], sizes = [64, 4], strides = [1, 1]} : vector<64x16xf32> to vector<64x4xf32>
    %153 = vector.shape_cast %152 : vector<64x4xf32> to vector<1x8x8x4xf32>
    %c0_182 = arith.constant 0 : index
    %c0_183 = arith.constant 0 : index
    %c0_184 = arith.constant 0 : index
    %c3_185 = arith.constant 3 : index
    %c0_186 = arith.constant 0 : index
    %c0_187 = arith.constant 0 : index
    %154 = vector.load %arg6[%c0_182, %c0_183, %c0_184, %c3_185, %c0_186, %c0_187] : memref<1x1x8x4x8x4xf32, #tpu.memory_space<vmem>>, vector<1x1x8x1x8x4xf32>
    %155 = vector.shape_cast %154 : vector<1x1x8x1x8x4xf32> to vector<1x8x8x4xf32>
    %156 = vector.shape_cast %153 : vector<1x8x8x4xf32> to vector<1x1x8x1x8x4xf32>
    tpu.vector_store %arg6[%c0_182, %c0_183, %c0_184, %c3_185, %c0_186, %c0_187], %156 {strides = array<i32>} : memref<1x1x8x4x8x4xf32, #tpu.memory_space<vmem>>, vector<1x1x8x1x8x4xf32>,
    return
  }
  func.func @transform_0(%arg0: i32) -> (i32, i32, i32, i32) {
    %c0_i32 = arith.constant 0 : i32
    %c0_i32_0 = arith.constant 0 : i32
    %c0_i32_1 = arith.constant 0 : i32
    %c0_i32_2 = arith.constant 0 : i32
    return %arg0, %c0_i32, %c0_i32_0, %c0_i32_1 : i32, i32, i32, i32
  }
  func.func @transform_1(%arg0: i32) -> (i32, i32, i32) {
    %c0_i32 = arith.constant 0 : i32
    %c0_i32_0 = arith.constant 0 : i32
    %c0_i32_1 = arith.constant 0 : i32
    %c0_i32_2 = arith.constant 0 : i32
    return %c0_i32, %c0_i32_0, %c0_i32_1 : i32, i32, i32
  }
  func.func @transform_2(%arg0: i32) -> (i32, i32) {
    %c0_i32 = arith.constant 0 : i32
    %c0_i32_0 = arith.constant 0 : i32
    %c0_i32_1 = arith.constant 0 : i32
    return %c0_i32, %c0_i32_0 : i32, i32
  }
  func.func @transform_3(%arg0: i32) -> (i32, i32, i32) {
    %c0_i32 = arith.constant 0 : i32
    %c0_i32_0 = arith.constant 0 : i32
    %c0_i32_1 = arith.constant 0 : i32
    %c0_i32_2 = arith.constant 0 : i32
    return %c0_i32, %c0_i32_0, %c0_i32_1 : i32, i32, i32
  }
  func.func @transform_4(%arg0: i32) -> (i32, i32) {
    %c0_i32 = arith.constant 0 : i32
    %c0_i32_0 = arith.constant 0 : i32
    %c0_i32_1 = arith.constant 0 : i32
    return %c0_i32, %c0_i32_0 : i32, i32
  }
  func.func @transform_5(%arg0: i32) -> (i32, i32, i32, i32, i32, i32) {
    %c0_i32 = arith.constant 0 : i32
    %c0_i32_0 = arith.constant 0 : i32
    %c0_i32_1 = arith.constant 0 : i32
    %c0_i32_2 = arith.constant 0 : i32
    %c0_i32_3 = arith.constant 0 : i32
    %c0_i32_4 = arith.constant 0 : i32
    return %arg0, %c0_i32, %c0_i32_0, %c0_i32_1, %c0_i32_2, %c0_i32_3 : i32, i32, i32, i32, i32, i32
  }
}

</mosaic_0001>

<bundles_post_ra>
// kernel: tile.9
= control target key start
LH: loop header
LB: loop body
LE: loop exit
PB: predicated region body
PF: predicated region fallthrough
CT: control target
= control target key end

     0   :  { %vm7_vm0 = vcmask 31744   ;;  %s37_s8 = smov 4   ;;  %s38_s9 = smov 8   ;;  %vm13_vm1 = vcmask 130144   ;;  %vm19_vm2 = vcmask 97344   ;;  %vm25_vm3 = vcmask 64544   ;;  %s55_s0 = inlined_call_operand.vmem [shape: f32[4,4], index: 0, kind: input, shape index: {}]   ;;  %s56_s1 = inlined_call_operand.vmem [shape: f32[1,16], index: 1, kind: output, shape index: {}]  }
   0x1   :  { %v4_v0 = vld [vmem:[%s55_s0] sm:$0xf]  ;;  %s36_s0 = smov 12  }
   0x2   :  { %5 = vst [vmem:[#allocation1] sm:$0xf] %v4_v0 }
   0x9   :  { %v10_v1 = vld [vmem:[#allocation1 + $0x3] sm:$0x1]   ;;  %v22_v2 = vld [vmem:[#allocation1 + $0x1] sm:$0x1]   ;;  %v6_v3 = vld [vmem:[#allocation1] sm:$0x1]  }
   0xa   :  { %11 = vrot.lane.b32.xlu0 %v10_v1, %s36_s0  ;;  %23 = vrot.lane.b32.xlu1 %v22_v2, %s37_s8  ;;  %v16_v4 = vld [vmem:[#allocation1 + $0x2] sm:$0x1]   ;;  %8 = vst.msk [vmem:[#allocation0] sm:$0x1] %vm7_vm0, %v6_v3  }
   0xe   :  { %17 = vrot.lane.b32.xlu0 %v16_v4, %s38_s9 }
  0x7c   :  { %v12_v5 = vpop.permute.xlu0 %11   ;;  %v24_v6 = vpop.permute.xlu1 %23  }
  0x7d   :  { %14 = vst.msk [vmem:[#allocation0] sm:$0x1] %vm13_vm1, %v12_v5  }
  0x80   :  { %v18_v7 = vpop.permute.xlu0 %17  }
  0x81   :  { %20 = vst.msk [vmem:[#allocation0] sm:$0x1] %vm19_vm2, %v18_v7  }
  0x82   :  { %26 = vst.msk [vmem:[#allocation0] sm:$0x1] %vm25_vm3, %v24_v6  }
  0x89   :  { %v30_v8 = vld [vmem:[#allocation0] sm:$0x1] }
  0x8a   :  { %32 = vst [vmem:[%s56_s1] sm:$0x1] %v30_v8 }

// kernel: tile.8
= control target key start
LH: loop header
LB: loop body
LE: loop exit
PB: predicated region body
PF: predicated region fallthrough
CT: control target
= control target key end

     0   :  { %s22_s0 = inlined_call_operand.vmem [shape: f32[4], index: 0, kind: input, shape index: {}]   ;;  %s23_s1 = inlined_call_operand.vmem [shape: f32[4,4], index: 1, kind: output, shape index: {}]  }
   0x1   :  { %v4_v0 = vld [vmem:[%s22_s0] ss:$0 sm:$0xff] }
   0x2   :  { %5 = vst [vmem:[%s23_s1] sm:$0xf] %v4_v0 }

// kernel: _decoder_fused.1
= control target key start
LH: loop header
LB: loop body
LE: loop exit
PB: predicated region body
PF: predicated region fallthrough
CT: control target
= control target key end

     0   :  { %s4033_s18 = smov 0   ;;  %s4625_s0 = inlined_call_operand.vmem [shape: f32[2,10,10,8], index: 0, kind: input, shape index: {}]   ;;  %s4626_s1 = inlined_call_operand.vmem [shape: f32[9,8,16], index: 1, kind: input, shape index: {}]   ;;  %s4627_s2 = inlined_call_operand.vmem [shape: f32[1,16], index: 2, kind: input, shape index: {}]   ;;  %s4628_s3 = inlined_call_operand.vmem [shape: f32[9,16,16], index: 3, kind: input, shape index: {}]   ;;  %s4629_s4 = inlined_call_operand.vmem [shape: f32[1,16], index: 4, kind: input, shape index: {}]   ;;  %s4630_s5 = inlined_call_operand.vmem [shape: f32[2,1,8,4,8,4], index: 5, kind: output, shape index: {}]  }
   0x1 LB: > { %s3104_s19 = sadd.s32 4294967295, %s3997_s18   ;;  %p3108_p0 = scmp.ge.s32.totalorder %s3997_s18, 1  ;;  %s3997_s18 = sphi %s4033_s18, %s15_s18  }
   0x2   : > { %p187_p1 = scmp.lt.s32.totalorder %s3997_s18, 3 }
   0x4   : > { %p188_p2 = pnand %p3108_p0, %p187_p1 }
   0x5   : > { %v3112_v0 = vld [vmem:[%s4626_s1 + $0x8] sm:$0xff] (!%p188_p2)  ;;  %p215_p3 = scmp.lt.s32.totalorder (!%p188_p2), %s3104_s19, 1  ;;  %v233_v1 = vld [vmem:[%s4626_s1] sm:$0xff] (!%p188_p2)  ;;  %vm244_vm0 = vcmask (!%p188_p2), 64512   ;;  %v3129_v5 = vld [vmem:[%s4626_s1 + $0x10] sm:$0xff] (!%p188_p2)  ;;  %vm1557_vm1 = vcmask (!%p188_p2), 130048  }
   0x6   : > { %191 = sbr.rel (%p188_p2) target bundleno = 885 (0x375), region = 40  ;;  %3528 = vmatprep.subr.mxu0 (!%p188_p2), %v3112_v0  ;;  %v3146_v14 = vld [vmem:[%s4626_s1 + $0x18] sm:$0xff] (!%p188_p2)  ;;  %v3163_v23 = vld [vmem:[%s4626_s1 + $0x20] sm:$0xff] (!%p188_p2)  ;;  %v3180_v29 = vld [vmem:[%s4626_s1 + $0x28] sm:$0xff] (!%p188_p2)  ;;  %vm1559_vm2 = vcmask (!%p188_p2), 123904   ;;  %vm1564_vm3 = vcmask (!%p188_p2), 122880  }
   0x7   : > { %3529 = vmatpush3.msra.mxu0 (!%p188_p2), %v3112_v0  ;;  %v3197_v31 = vld [vmem:[%s4626_s1 + $0x30] sm:$0xff] (!%p188_p2)  ;;  %v3214_v33 = vld [vmem:[%s4626_s1 + $0x38] sm:$0xff] (!%p188_p2)  ;;  %v3231_v35 = vld [vmem:[%s4626_s1 + $0x40] sm:$0xff] (!%p188_p2)  ;;  %v3999_v39 = vmov (!%p188_p2), 0.0   ;;  %vm2933_vm4 = vcmask (!%p188_p2), 31744   ;;  %s4001_s15 = smov (!%p188_p2), 124  }
   0x8   : > { %3542 = vmatprep.subr.mxu0 (!%p188_p2), %v233_v1  ;;  %1558 = vst.msk [vmem:[#allocation2] sm:$0xff] (!%p188_p2), %vm1557_vm1, %v3999_v39  ;;  %1562 = vst.msk [vmem:[#allocation2 + $0x90] sm:$0xff] (!%p188_p2), %vm1557_vm1, %v3999_v39  ;;  %v3241_v40 = vld [vmem:[%s4628_s3 + $0x10] sm:$0xff] (!%p188_p2)  ;;  %v3242_v41 = vld [vmem:[%s4628_s3 + $0x18] sm:$0xff] (!%p188_p2)  ;;  %s4002_s16 = smov (!%p188_p2), 116  }
   0x9   : > { %1560 = vst.msk [vmem:[#allocation2 + $0x8] sm:$0x3] (!%p188_p2), %vm1559_vm2, %v3999_v39  ;;  %1563 = vst.msk [vmem:[#allocation2 + $0x98] sm:$0x3] (!%p188_p2), %vm1559_vm2, %v3999_v39  ;;  %v3798_v42 = vpack.c.bf16 (!%p188_p2), %v3242_v41, %v3241_v40  ;;  %v1602_v44 = vld [vmem:[%s4628_s3] sm:$0xff] (!%p188_p2)  ;;  %v1603_v45 = vld [vmem:[%s4628_s3 + $0x8] sm:$0xff] (!%p188_p2) }
   0xa   : > { %1566 = vst.msk [vmem:[#allocation2 + $0x10] sm:$0x1] (!%p188_p2), %vm1564_vm3, %v3999_v39  ;;  %1567 = vst.msk [vmem:[#allocation2 + $0x20] sm:$0x1] (!%p188_p2), %vm1564_vm3, %v3999_v39  ;;  %v3802_v46 = vpack.c.bf16 (!%p188_p2), %v1603_v45, %v1602_v44  ;;  %v3240_v47 = vld [vmem:[%s4627_s2] ss:$0 sm:$0xff] (!%p188_p2) }
   0xb   : > { %1568 = vst.msk [vmem:[#allocation2 + $0x30] sm:$0x1] (!%p188_p2), %vm1564_vm3, %v3999_v39  ;;  %1569 = vst.msk [vmem:[#allocation2 + $0x40] sm:$0x1] (!%p188_p2), %vm1564_vm3, %v3999_v39  ;;  %3799 = vmatprep.subr.bf16.mxu1 (!%p188_p2), %v3798_v42  ;;  %v3259_v63 = vld [vmem:[%s4628_s3 + $0x20] sm:$0xff] (!%p188_p2)  ;;  %v3260_v0 = vld [vmem:[%s4628_s3 + $0x28] sm:$0xff] (!%p188_p2) }
   0xc   : > { %1570 = vst.msk [vmem:[#allocation2 + $0x50] sm:$0x1] (!%p188_p2), %vm1564_vm3, %v3999_v39  ;;  %1571 = vst.msk [vmem:[#allocation2 + $0x60] sm:$0x1] (!%p188_p2), %vm1564_vm3, %v3999_v39  ;;  %3801 = vmatpush3.bf16.msra.mxu1 (!%p188_p2), %v3798_v42  ;;  %v3289_v40 = vld [vmem:[%s4628_s3 + $0x50] sm:$0xff] (!%p188_p2)  ;;  %v3290_v41 = vld [vmem:[%s4628_s3 + $0x58] sm:$0xff] (!%p188_p2) }
   0xd   : > { %s4632_s19 = smov (!%p215_p3, %s3104_s19), 1  ;;  %1572 = vst.msk [vmem:[#allocation2 + $0x70] sm:$0x1] %vm1564_vm3, %v3999_v39  ;;  %1573 = vst.msk [vmem:[#allocation2 + $0x80] sm:$0x1] %vm1564_vm3, %v3999_v39  ;;  %3803 = vmatprep.subr.bf16.mxu1 %v3802_v46  ;;  %v3818_v42 = vpack.c.bf16 %v3290_v41, %v3289_v40  ;;  %v3299_v44 = vld [vmem:[%s4628_s3 + $0x60] sm:$0xff] }
   0xe   : > { %s3962_s24 = smul.u32 160, %s4632_s19  ;;  %1576 = vst.msk [vmem:[#allocation2 + $0x19] sm:$0x1] %vm1564_vm3, %v3999_v39  ;;  %1577 = vst.msk [vmem:[#allocation2 + $0x29] sm:$0x1] %vm1564_vm3, %v3999_v39  ;;  %v3300_v45 = vld [vmem:[%s4628_s3 + $0x68] sm:$0xff] }
   0xf   : > { %1578 = vst.msk [vmem:[#allocation2 + $0x39] sm:$0x1] %vm1564_vm3, %v3999_v39  ;;  %1579 = vst.msk [vmem:[#allocation2 + $0x49] sm:$0x1] %vm1564_vm3, %v3999_v39  ;;  %s3356_s11 = sshll.u32 %s4632_s19, 8  ;;  %s4000_s19 = smov 120  }
  0x10   : > { %s4053_s27 = scalar_lea.vmem %s4625_s0, %s3962_s24  ;;  %1580 = vst.msk [vmem:[#allocation2 + $0x59] sm:$0x1] %vm1564_vm3, %v3999_v39  ;;  %1581 = vst.msk [vmem:[#allocation2 + $0x69] sm:$0x1] %vm1564_vm3, %v3999_v39  ;;  %v1604_v43 = vld [vmem:[#allocation2 + $0x1] sm:$0xff]  ;;  %s4532_s14 = scalar_lea.vmem %s4630_s5, %s3356_s11 }
  0x11   : > { %v234_v2 = vld [vmem:[%s4053_s27 + $0x1] sm:$0xff]  ;;  %v4057_v3 = vld [vmem:[%s4053_s27 + $0x11] sm:$0xff]  ;;  %1582 = vst.msk [vmem:[#allocation2 + $0x79] sm:$0x1] %vm1564_vm3, %v3999_v39  ;;  %1583 = vst.msk [vmem:[#allocation2 + $0x89] sm:$0x1] %vm1564_vm3, %v3999_v39  ;;  %3658 = vmatprep.mubr.msk.f32.mxu1 %vm1557_vm1, %v1604_v43 }
  0x12   : > { %v4060_v4 = vld [vmem:[%s4053_s27 + $0x21] sm:$0xff]  ;;  %3530 = vmatprep.mubr.msk.f32.mxu0 %vm244_vm0, %v234_v2  ;;  %v4071_v6 = vld [vmem:[%s4053_s27 + $0x31] sm:$0xff]  ;;  %1575 = vst.msk [vmem:[#allocation2 + $0x9] sm:$0x1] %vm1564_vm3, %v3999_v39  ;;  %1565 = vst.msk [vmem:[#allocation2] sm:$0x1] %vm1564_vm3, %v3999_v39 }
  0x13   : > { %3531 = vmatmul.mubr.msk.f32.vlgmr.msra.gmra.mrb[0].mxu0 %vm244_vm0, %v4057_v3  ;;  %v4074_v7 = vld [vmem:[%s4053_s27 + $0x41] sm:$0xff]  ;;  %v4081_v8 = vld [vmem:[%s4053_s27 + $0x51] sm:$0xff]  ;;  %1584 = vst.msk [vmem:[#allocation2 + $0x99] sm:$0x1] %vm1564_vm3, %v3999_v39  ;;  %1574 = vst.msk [vmem:[#allocation2 + $0x90] sm:$0x1] %vm1564_vm3, %v3999_v39 }
  0x14   : > { %3543 = vmatpush3.msra.mxu0 %v233_v1  ;;  %3533 = vmatprep.mubr.msk.f32.mxu0 %vm244_vm0, %v4060_v4  ;;  %v4084_v9 = vld [vmem:[%s4053_s27 + $0x61] sm:$0xff]  ;;  %v4091_v10 = vld [vmem:[%s4053_s27 + $0x71] sm:$0xff] }
  0x15   : > { %3556 = vmatprep.subr.mxu0 %v3129_v5  ;;  %v225_v11 = vld [vmem:[%s4053_s27] sm:$0xff]  ;;  %v226_v12 = vld [vmem:[%s4053_s27 + $0x10] sm:$0xff] }
  0x16   : > { %v4099_v13 = vld [vmem:[%s4053_s27 + $0x20] sm:$0xff]  ;;  %v4108_v15 = vld [vmem:[%s4053_s27 + $0x30] sm:$0xff] }
  0x17   : > { %3534 = vmatmul.mubr.msk.f32.gmra.mrb[2].mxu0 %vm244_vm0, %v4071_v6  ;;  %v4111_v16 = vld [vmem:[%s4053_s27 + $0x40] sm:$0xff]  ;;  %v4118_v17 = vld [vmem:[%s4053_s27 + $0x50] sm:$0xff] }
  0x18   : > { %3536 = vmatprep.mubr.msk.f32.mxu0 %vm244_vm0, %v4074_v7  ;;  %v4121_v18 = vld [vmem:[%s4053_s27 + $0x60] sm:$0xff]  ;;  %v4128_v19 = vld [vmem:[%s4053_s27 + $0x70] sm:$0xff] }
  0x19   : > { %v503_v20 = vld [vmem:[%s4053_s27 + $0x2] sm:$0xff]  ;;  %v504_v21 = vld [vmem:[%s4053_s27 + $0x12] sm:$0xff] }
  0x1a   : > { %v4136_v22 = vld [vmem:[%s4053_s27 + $0x22] sm:$0xff]  ;;  %v4145_v24 = vld [vmem:[%s4053_s27 + $0x32] sm:$0xff] }
  0x1b   : > { %3537 = vmatmul.mubr.msk.f32.gmra.mrb[4].mxu0 %vm244_vm0, %v4081_v8  ;;  %v4148_v25 = vld [vmem:[%s4053_s27 + $0x42] sm:$0xff]  ;;  %v4155_v26 = vld [vmem:[%s4053_s27 + $0x52] sm:$0xff] }
  0x1c   : > { %3539 = vmatprep.mubr.msk.f32.mxu0 %vm244_vm0, %v4084_v9  ;;  %v4158_v27 = vld [vmem:[%s4053_s27 + $0x62] sm:$0xff]  ;;  %v4165_v28 = vld [vmem:[%s4053_s27 + $0x72] sm:$0xff] }
  0x1d   : > { %v3145_v30 = vld [vmem:[%s4053_s27 + $0x80] sm:$0xff]  ;;  %v3196_v36 = vld [vmem:[%s4053_s27 + $0x90] sm:$0xff] }
  0x1e   : > { %v3162_v32 = vld [vmem:[%s4053_s27 + $0x81] sm:$0xff]  ;;  %v3213_v37 = vld [vmem:[%s4053_s27 + $0x91] sm:$0xff] }
  0x1f   : > { %3540 = vmatmul.mubr.msk.f32.gmra.mrb[6].mxu0 %vm244_vm0, %v4091_v10  ;;  %v3179_v34 = vld [vmem:[%s4053_s27 + $0x82] sm:$0xff]  ;;  %v3230_v38 = vld [vmem:[%s4053_s27 + $0x92] sm:$0xff] }
  0x20   : > { %3544 = vmatprep.mubr.msk.f32.mxu0 %vm244_vm0, %v225_v11 }
  0x23   : > { %3545 = vmatmul.mubr.msk.f32.vlgmr.msra.gmra.mrb[0].mxu0 %vm244_vm0, %v226_v12 }
  0x24   : > { %3557 = vmatpush3.msra.mxu0 %v3129_v5  ;;  %3547 = vmatprep.mubr.msk.f32.mxu0 %vm244_vm0, %v4099_v13  ;;  %v3806_v5 = vpack.c.bf16 %v3260_v0, %v3259_v63 }
  0x25   : > { %3570 = vmatprep.subr.mxu0 %v3146_v14 }
  0x27   : > { %3548 = vmatmul.mubr.msk.f32.gmra.mrb[2].mxu0 %vm244_vm0, %v4108_v15 }
  0x28   : > { %3550 = vmatprep.mubr.msk.f32.mxu0 %vm244_vm0, %v4111_v16 }
  0x2b   : > { %3551 = vmatmul.mubr.msk.f32.gmra.mrb[4].mxu0 %vm244_vm0, %v4118_v17 }
  0x2c   : > { %3553 = vmatprep.mubr.msk.f32.mxu0 %vm244_vm0, %v4121_v18 }
  0x2f   : > { %3554 = vmatmul.mubr.msk.f32.gmra.mrb[6].mxu0 %vm244_vm0, %v4128_v19 }
  0x30   : > { %3558 = vmatprep.mubr.msk.f32.mxu0 %vm244_vm0, %v503_v20  ;;  %v3270_v20 = vld [vmem:[%s4628_s3 + $0x38] sm:$0xff] }
  0x33   : > { %3559 = vmatmul.mubr.msk.f32.vlgmr.msra.gmra.mrb[0].mxu0 %vm244_vm0, %v504_v21 }
  0x34   : > { %3571 = vmatpush3.msra.mxu0 %v3146_v14  ;;  %3561 = vmatprep.mubr.msk.f32.mxu0 %vm244_vm0, %v4136_v22 }
  0x35   : > { %3584 = vmatprep.subr.mxu0 %v3163_v23 }
  0x37   : > { %3562 = vmatmul.mubr.msk.f32.gmra.mrb[2].mxu0 %vm244_vm0, %v4145_v24 }
  0x38   : > { %3564 = vmatprep.mubr.msk.f32.mxu0 %vm244_vm0, %v4148_v25 }
  0x3b   : > { %3565 = vmatmul.mubr.msk.f32.gmra.mrb[4].mxu0 %vm244_vm0, %v4155_v26 }
  0x3c   : > { %3567 = vmatprep.mubr.msk.f32.mxu0 %vm244_vm0, %v4158_v27 }
  0x3f   : > { %3568 = vmatmul.mubr.msk.f32.gmra.mrb[6].mxu0 %vm244_vm0, %v4165_v28 }
  0x40   : > { %3572 = vmatprep.mubr.msk.f32.mxu0 %vm244_vm0, %v226_v12 }
  0x43   : > { %3573 = vmatmul.mubr.msk.f32.vlgmr.msra.gmra.mrb[0].mxu0 %vm244_vm0, %v4099_v13 }
  0x44   : > { %3585 = vmatpush3.msra.mxu0 %v3163_v23  ;;  %3575 = vmatprep.mubr.msk.f32.mxu0 %vm244_vm0, %v4108_v15 }
  0x45   : > { %3598 = vmatprep.subr.mxu0 %v3180_v29 }
  0x47   : > { %3576 = vmatmul.mubr.msk.f32.gmra.mrb[2].mxu0 %vm244_vm0, %v4111_v16 }
  0x48   : > { %3578 = vmatprep.mubr.msk.f32.mxu0 %vm244_vm0, %v4118_v17 }
  0x4b   : > { %3579 = vmatmul.mubr.msk.f32.gmra.mrb[4].mxu0 %vm244_vm0, %v4121_v18 }
  0x4c   : > { %3581 = vmatprep.mubr.msk.f32.mxu0 %vm244_vm0, %v4128_v19 }
  0x4f   : > { %3582 = vmatmul.mubr.msk.f32.gmra.mrb[6].mxu0 %vm244_vm0, %v3145_v30 }
  0x50   : > { %3586 = vmatprep.mubr.msk.f32.mxu0 %vm244_vm0, %v4057_v3 }
  0x53   : > { %3587 = vmatmul.mubr.msk.f32.vlgmr.msra.gmra.mrb[0].mxu0 %vm244_vm0, %v4060_v4 }
  0x54   : > { %3599 = vmatpush3.msra.mxu0 %v3180_v29  ;;  %3589 = vmatprep.mubr.msk.f32.mxu0 %vm244_vm0, %v4071_v6 }
  0x55   : > { %3612 = vmatprep.subr.mxu0 %v3197_v31 }
  0x57   : > { %3590 = vmatmul.mubr.msk.f32.gmra.mrb[2].mxu0 %vm244_vm0, %v4074_v7 }
  0x58   : > { %3592 = vmatprep.mubr.msk.f32.mxu0 %vm244_vm0, %v4081_v8 }
  0x5b   : > { %3593 = vmatmul.mubr.msk.f32.gmra.mrb[4].mxu0 %vm244_vm0, %v4084_v9 }
  0x5c   : > { %3595 = vmatprep.mubr.msk.f32.mxu0 %vm244_vm0, %v4091_v10 }
  0x5f   : > { %3596 = vmatmul.mubr.msk.f32.gmra.mrb[6].mxu0 %vm244_vm0, %v3162_v32 }
  0x60   : > { %3600 = vmatprep.mubr.msk.f32.mxu0 %vm244_vm0, %v504_v21 }
  0x63   : > { %3601 = vmatmul.mubr.msk.f32.vlgmr.msra.gmra.mrb[0].mxu0 %vm244_vm0, %v4136_v22 }
  0x64   : > { %3613 = vmatpush3.msra.mxu0 %v3197_v31  ;;  %3603 = vmatprep.mubr.msk.f32.mxu0 %vm244_vm0, %v4145_v24  ;;  %v3280_v31 = vld [vmem:[%s4628_s3 + $0x48] sm:$0xff] }
  0x65   : > { %3626 = vmatprep.subr.mxu0 %v3214_v33 }
  0x67   : > { %3604 = vmatmul.mubr.msk.f32.gmra.mrb[2].mxu0 %vm244_vm0, %v4148_v25 }
  0x68   : > { %3606 = vmatprep.mubr.msk.f32.mxu0 %vm244_vm0, %v4155_v26 }
  0x6b   : > { %3607 = vmatmul.mubr.msk.f32.gmra.mrb[4].mxu0 %vm244_vm0, %v4158_v27 }
  0x6c   : > { %3609 = vmatprep.mubr.msk.f32.mxu0 %vm244_vm0, %v4165_v28 }
  0x6f   : > { %3610 = vmatmul.mubr.msk.f32.gmra.mrb[6].mxu0 %vm244_vm0, %v3179_v34 }
  0x70   : > { %3614 = vmatprep.mubr.msk.f32.mxu0 %vm244_vm0, %v4099_v13 }
  0x73   : > { %3615 = vmatmul.mubr.msk.f32.vlgmr.msra.gmra.mrb[0].mxu0 %vm244_vm0, %v4108_v15 }
  0x74   : > { %3627 = vmatpush3.msra.mxu0 %v3214_v33  ;;  %3617 = vmatprep.mubr.msk.f32.mxu0 %vm244_vm0, %v4111_v16 }
  0x75   : > { %3640 = vmatprep.subr.mxu0 %v3231_v35 }
  0x77   : > { %3618 = vmatmul.mubr.msk.f32.gmra.mrb[2].mxu0 %vm244_vm0, %v4118_v17  ;;  %v1594_v17 = vld [vmem:[#allocation2] sm:$0xff] }
  0x78   : > { %3620 = vmatprep.mubr.msk.f32.mxu0 %vm244_vm0, %v4121_v18 }
  0x7b   : > { %3621 = vmatmul.mubr.msk.f32.gmra.mrb[4].mxu0 %vm244_vm0, %v4128_v19  ;;  %v3269_v19 = vld [vmem:[%s4628_s3 + $0x30] sm:$0xff] }
  0x7c   : > { %3623 = vmatprep.mubr.msk.f32.mxu0 %vm244_vm0, %v3145_v30  ;;  %v3810_v21 = vpack.c.bf16 %v3270_v20, %v3269_v19  ;;  %v3279_v30 = vld [vmem:[%s4628_s3 + $0x40] sm:$0xff] }
  0x7f   : > { %3624 = vmatmul.mubr.msk.f32.gmra.mrb[6].mxu0 %vm244_vm0, %v3196_v36 }
  0x80   : > { %3628 = vmatprep.mubr.msk.f32.mxu0 %vm244_vm0, %v4060_v4 }
  0x83   : > { %3629 = vmatmul.mubr.msk.f32.vlgmr.msra.gmra.mrb[0].mxu0 %vm244_vm0, %v4071_v6 }
  0x84   : > { %3641 = vmatpush3.msra.mxu0 %v3231_v35  ;;  %3631 = vmatprep.mubr.msk.f32.mxu0 %vm244_vm0, %v4074_v7 }
  0x87   : > { %3632 = vmatmul.mubr.msk.f32.gmra.mrb[2].mxu0 %vm244_vm0, %v4081_v8 }
  0x88   : > { %3634 = vmatprep.mubr.msk.f32.mxu0 %vm244_vm0, %v4084_v9 }
  0x8b   : > { %3635 = vmatmul.mubr.msk.f32.gmra.mrb[4].mxu0 %vm244_vm0, %v4091_v10 }
  0x8c   : > { %3637 = vmatprep.mubr.msk.f32.mxu0 %vm244_vm0, %v3162_v32  ;;  %v3814_v32 = vpack.c.bf16 %v3280_v31, %v3279_v30 }
  0x8f   : > { %3638 = vmatmul.mubr.msk.f32.gmra.mrb[6].mxu0 %vm244_vm0, %v3213_v37 }
  0x90   : > { %3642 = vmatprep.mubr.msk.f32.mxu0 %vm244_vm0, %v4136_v22 }
  0x93   : > { %3643 = vmatmul.mubr.msk.f32.vlgmr.msra.gmra.mrb[0].mxu0 %vm244_vm0, %v4145_v24 }
  0x94   : > { %3645 = vmatprep.mubr.msk.f32.mxu0 %vm244_vm0, %v4148_v25 }
  0x97   : > { %3646 = vmatmul.mubr.msk.f32.gmra.mrb[2].mxu0 %vm244_vm0, %v4155_v26 }
  0x98   : > { %3648 = vmatprep.mubr.msk.f32.mxu0 %vm244_vm0, %v4158_v27 }
  0x9b   : > { %3649 = vmatmul.mubr.msk.f32.gmra.mrb[4].mxu0 %vm244_vm0, %v4165_v28  ;;  %v1873_v28 = vld [vmem:[#allocation2 + $0x2] sm:$0xff] }
  0x9c   : > { %3651 = vmatprep.mubr.msk.f32.mxu0 %vm244_vm0, %v3179_v34 }
  0x9f   : > { %3652 = vmatmul.mubr.msk.f32.gmra.mrb[6].mxu0 %vm244_vm0, %v3230_v38 }
 0x166   : > { %v3644_v48 = vpop.f32.mrb[0].mxu0 }
 0x167   : > { %v1542_v49 = vadd.f32 %v3644_v48, %v3240_v47  ;;  %v1487_v50 = vpop.f32.mrb[1].mxu0  ;;  %v3309_v48 = vld [vmem:[%s4628_s3 + $0x70] sm:$0xff] }
 0x168   : > { %v1541_v51 = vadd.f32 %v3240_v47, %v1487_v50 }
 0x169   : > { %v1550_v52 = vmax.f32 %v1542_v49, 0.0  ;;  %v3310_v49 = vld [vmem:[%s4628_s3 + $0x78] sm:$0xff] }
 0x16a   : > { %v1549_v53 = vmax.f32 %v1541_v51, 0.0  ;;  %v3647_v54 = vpop.f32.mrb[2].mxu0  ;;  %v3826_v50 = vpack.c.bf16 %v3310_v49, %v3309_v48 }
 0x16b   : > { %1587 = vst.msk [vmem:[#allocation2 + $0x21] sm:$0xff] %vm1557_vm1, %v1550_v52  ;;  %v1544_v55 = vadd.f32 %v3647_v54, %v3240_v47  ;;  %v1497_v56 = vpop.f32.mrb[3].mxu0  ;;  %v3319_v52 = vld [vmem:[%s4628_s3 + $0x80] sm:$0xff] }
 0x16c   : > { %1586 = vst.msk [vmem:[#allocation2 + $0x11] sm:$0xff] %vm1557_vm1, %v1549_v53  ;;  %v1543_v57 = vadd.f32 %v3240_v47, %v1497_v56  ;;  %v3320_v53 = vld [vmem:[%s4628_s3 + $0x88] sm:$0xff]  ;;  %v2621_v56 = vld [vmem:[#allocation2 + $0x91] sm:$0xff] }
 0x16d   : > { %v1552_v58 = vmax.f32 %v1544_v55, 0.0  ;;  %v3830_v54 = vpack.c.bf16 %v3320_v53, %v3319_v52  ;;  %v2473_v55 = vld [vmem:[#allocation2 + $0x90] sm:$0xff] }
 0x16e   : > { %v1551_v59 = vmax.f32 %v1543_v57, 0.0  ;;  %v3650_v60 = vpop.f32.mrb[4].mxu0  ;;  %v2769_v57 = vld [vmem:[#allocation2 + $0x92] sm:$0xff] }
 0x16f   : > { %1589 = vst.msk [vmem:[#allocation2 + $0x41] sm:$0xff] %vm1557_vm1, %v1552_v58  ;;  %v1546_v61 = vadd.f32 %v3650_v60, %v3240_v47  ;;  %v1507_v62 = vpop.f32.mrb[5].mxu0  ;;  %v3329_v58 = vld [vmem:[%s4629_s4] ss:$0 sm:$0xff] }
 0x170   : > { %1588 = vst.msk [vmem:[#allocation2 + $0x31] sm:$0xff] %vm1557_vm1, %v1551_v59  ;;  %v1545_v1 = vadd.f32 %v3240_v47, %v1507_v62 }
 0x171   : > { %v1554_v2 = vmax.f32 %v1546_v61, 0.0 }
 0x172   : > { %v1553_v3 = vmax.f32 %v1545_v1, 0.0  ;;  %v3653_v4 = vpop.f32.mrb[6].mxu0  ;;  %v4326_v10 = vld [vmem:[#allocation2 + $0x21] sm:$0xff] }
 0x173   : > { %1591 = vst.msk [vmem:[#allocation2 + $0x61] sm:$0xff] %vm1557_vm1, %v1554_v2  ;;  %v1548_v6 = vadd.f32 %v3653_v4, %v3240_v47  ;;  %v1517_v7 = vpop.f32.mrb[7].mxu0  ;;  %v4321_v8 = vld [vmem:[#allocation2 + $0x11] sm:$0xff]  ;;  %v4360_v23 = vld [vmem:[#allocation2 + $0x20] sm:$0xff] }
 0x174   : > { %1590 = vst.msk [vmem:[#allocation2 + $0x51] sm:$0xff] %vm1557_vm1, %v1553_v3  ;;  %v1547_v9 = vadd.f32 %v3240_v47, %v1517_v7  ;;  %3659 = vmatmul.mubr.msk.f32.vlgmr.msra.gmra.mrb[0].mxu1 %vm1557_vm1, %v4321_v8  ;;  %v1595_v22 = vld [vmem:[#allocation2 + $0x10] sm:$0xff]  ;;  %v4392_v34 = vld [vmem:[#allocation2 + $0x22] sm:$0xff] }
 0x175   : > { %v1556_v11 = vmax.f32 %v1548_v6, 0.0  ;;  %3805 = vmatpush3.bf16.msra.mxu1 %v3802_v46  ;;  %3661 = vmatprep.mubr.msk.f32.mxu1 %vm1557_vm1, %v4326_v10  ;;  %v1874_v33 = vld [vmem:[#allocation2 + $0x12] sm:$0xff]  ;;  %v3822_v46 = vpack.c.bf16 %v3300_v45, %v3299_v44 }
 0x176   : > { %v1555_v12 = vmax.f32 %v1547_v9, 0.0  ;;  %3807 = vmatprep.subr.bf16.mxu1 %v3806_v5  ;;  %v4336_v14 = vld [vmem:[#allocation2 + $0x41] sm:$0xff] }
 0x177   : > { %1593 = vst.msk [vmem:[#allocation2 + $0x81] sm:$0xff] %vm1557_vm1, %v1556_v11  ;;  %v4331_v13 = vld [vmem:[#allocation2 + $0x31] sm:$0xff]  ;;  %v4368_v25 = vld [vmem:[#allocation2 + $0x40] sm:$0xff] }
 0x178   : > { %1592 = vst.msk [vmem:[#allocation2 + $0x71] sm:$0xff] %vm1557_vm1, %v1555_v12  ;;  %3662 = vmatmul.mubr.msk.f32.gmra.mrb[2].mxu1 %vm1557_vm1, %v4331_v13  ;;  %v4364_v24 = vld [vmem:[#allocation2 + $0x30] sm:$0xff]  ;;  %v4400_v36 = vld [vmem:[#allocation2 + $0x42] sm:$0xff] }
 0x179   : > { %3664 = vmatprep.mubr.msk.f32.mxu1 %vm1557_vm1, %v4336_v14  ;;  %v4396_v35 = vld [vmem:[#allocation2 + $0x32] sm:$0xff] }
 0x17a   : > { %v4344_v16 = vld [vmem:[#allocation2 + $0x61] sm:$0xff] }
 0x17b   : > { %v4340_v15 = vld [vmem:[#allocation2 + $0x51] sm:$0xff]  ;;  %v4376_v27 = vld [vmem:[#allocation2 + $0x60] sm:$0xff] }
 0x17c   : > { %3665 = vmatmul.mubr.msk.f32.gmra.mrb[4].mxu1 %vm1557_vm1, %v4340_v15  ;;  %v4372_v26 = vld [vmem:[#allocation2 + $0x50] sm:$0xff]  ;;  %v4408_v38 = vld [vmem:[#allocation2 + $0x62] sm:$0xff] }
 0x17d   : > { %3667 = vmatprep.mubr.msk.f32.mxu1 %vm1557_vm1, %v4344_v16  ;;  %v4404_v37 = vld [vmem:[#allocation2 + $0x52] sm:$0xff] }
 0x17e   : > { %v2028_v43 = vld [vmem:[#allocation2 + $0x80] sm:$0xff] }
 0x17f   : > { %v4348_v18 = vld [vmem:[#allocation2 + $0x71] sm:$0xff]  ;;  %v2176_v47 = vld [vmem:[#allocation2 + $0x81] sm:$0xff] }
 0x180   : > { %3668 = vmatmul.mubr.msk.f32.gmra.mrb[6].mxu1 %vm1557_vm1, %v4348_v18  ;;  %v4380_v29 = vld [vmem:[#allocation2 + $0x70] sm:$0xff]  ;;  %v2324_v51 = vld [vmem:[#allocation2 + $0x82] sm:$0xff] }
 0x181   : > { %3674 = vmatprep.mubr.msk.f32.mxu1 %vm1557_vm1, %v1594_v17  ;;  %v4412_v39 = vld [vmem:[#allocation2 + $0x72] sm:$0xff] }
 0x184   : > { %3675 = vmatmul.mubr.msk.f32.vlgmr.msra.gmra.mrb[0].mxu1 %vm1557_vm1, %v1595_v22 }
 0x185   : > { %3809 = vmatpush3.bf16.msra.mxu1 %v3806_v5  ;;  %3677 = vmatprep.mubr.msk.f32.mxu1 %vm1557_vm1, %v4360_v23 }
 0x186   : > { %3811 = vmatprep.subr.bf16.mxu1 %v3810_v21 }
 0x188   : > { %3678 = vmatmul.mubr.msk.f32.gmra.mrb[2].mxu1 %vm1557_vm1, %v4364_v24 }
 0x189   : > { %3680 = vmatprep.mubr.msk.f32.mxu1 %vm1557_vm1, %v4368_v25 }
 0x18c   : > { %3681 = vmatmul.mubr.msk.f32.gmra.mrb[4].mxu1 %vm1557_vm1, %v4372_v26 }
 0x18d   : > { %3683 = vmatprep.mubr.msk.f32.mxu1 %vm1557_vm1, %v4376_v27 }
 0x190   : > { %3684 = vmatmul.mubr.msk.f32.gmra.mrb[6].mxu1 %vm1557_vm1, %v4380_v29 }
 0x191   : > { %3690 = vmatprep.mubr.msk.f32.mxu1 %vm1557_vm1, %v1873_v28 }
 0x194   : > { %3691 = vmatmul.mubr.msk.f32.vlgmr.msra.gmra.mrb[0].mxu1 %vm1557_vm1, %v1874_v33 }
 0x195   : > { %3813 = vmatpush3.bf16.msra.mxu1 %v3810_v21  ;;  %3693 = vmatprep.mubr.msk.f32.mxu1 %vm1557_vm1, %v4392_v34 }
 0x196   : > { %3815 = vmatprep.subr.bf16.mxu1 %v3814_v32 }
 0x198   : > { %3694 = vmatmul.mubr.msk.f32.gmra.mrb[2].mxu1 %vm1557_vm1, %v4396_v35 }
 0x199   : > { %3696 = vmatprep.mubr.msk.f32.mxu1 %vm1557_vm1, %v4400_v36 }
 0x19c   : > { %3697 = vmatmul.mubr.msk.f32.gmra.mrb[4].mxu1 %vm1557_vm1, %v4404_v37 }
 0x19d   : > { %3699 = vmatprep.mubr.msk.f32.mxu1 %vm1557_vm1, %v4408_v38 }
 0x1a0   : > { %3700 = vmatmul.mubr.msk.f32.gmra.mrb[6].mxu1 %vm1557_vm1, %v4412_v39 }
 0x1a1   : > { %3706 = vmatprep.mubr.msk.f32.mxu1 %vm1557_vm1, %v1595_v22 }
 0x1a4   : > { %3707 = vmatmul.mubr.msk.f32.vlgmr.msra.gmra.mrb[0].mxu1 %vm1557_vm1, %v4360_v23 }
 0x1a5   : > { %3817 = vmatpush3.bf16.msra.mxu1 %v3814_v32  ;;  %3709 = vmatprep.mubr.msk.f32.mxu1 %vm1557_vm1, %v4364_v24 }
 0x1a6   : > { %3819 = vmatprep.subr.bf16.mxu1 %v3818_v42 }
 0x1a8   : > { %3710 = vmatmul.mubr.msk.f32.gmra.mrb[2].mxu1 %vm1557_vm1, %v4368_v25 }
 0x1a9   : > { %3712 = vmatprep.mubr.msk.f32.mxu1 %vm1557_vm1, %v4372_v26 }
 0x1ac   : > { %3713 = vmatmul.mubr.msk.f32.gmra.mrb[4].mxu1 %vm1557_vm1, %v4376_v27 }
 0x1ad   : > { %3715 = vmatprep.mubr.msk.f32.mxu1 %vm1557_vm1, %v4380_v29 }
 0x1b0   : > { %3716 = vmatmul.mubr.msk.f32.gmra.mrb[6].mxu1 %vm1557_vm1, %v2028_v43 }
 0x1b1   : > { %3722 = vmatprep.mubr.msk.f32.mxu1 %vm1557_vm1, %v4321_v8 }
 0x1b4   : > { %3723 = vmatmul.mubr.msk.f32.vlgmr.msra.gmra.mrb[0].mxu1 %vm1557_vm1, %v4326_v10 }
 0x1b5   : > { %3821 = vmatpush3.bf16.msra.mxu1 %v3818_v42  ;;  %3725 = vmatprep.mubr.msk.f32.mxu1 %vm1557_vm1, %v4331_v13 }
 0x1b6   : > { %3823 = vmatprep.subr.bf16.mxu1 %v3822_v46 }
 0x1b8   : > { %3726 = vmatmul.mubr.msk.f32.gmra.mrb[2].mxu1 %vm1557_vm1, %v4336_v14 }
 0x1b9   : > { %3728 = vmatprep.mubr.msk.f32.mxu1 %vm1557_vm1, %v4340_v15 }
 0x1bc   : > { %3729 = vmatmul.mubr.msk.f32.gmra.mrb[4].mxu1 %vm1557_vm1, %v4344_v16 }
 0x1bd   : > { %3731 = vmatprep.mubr.msk.f32.mxu1 %vm1557_vm1, %v4348_v18 }
 0x1c0   : > { %3732 = vmatmul.mubr.msk.f32.gmra.mrb[6].mxu1 %vm1557_vm1, %v2176_v47 }
 0x1c1   : > { %3738 = vmatprep.mubr.msk.f32.mxu1 %vm1557_vm1, %v1874_v33 }
 0x1c4   : > { %3739 = vmatmul.mubr.msk.f32.vlgmr.msra.gmra.mrb[0].mxu1 %vm1557_vm1, %v4392_v34 }
 0x1c5   : > { %3825 = vmatpush3.bf16.msra.mxu1 %v3822_v46  ;;  %3741 = vmatprep.mubr.msk.f32.mxu1 %vm1557_vm1, %v4396_v35 }
 0x1c6   : > { %3827 = vmatprep.subr.bf16.mxu1 %v3826_v50 }
 0x1c8   : > { %3742 = vmatmul.mubr.msk.f32.gmra.mrb[2].mxu1 %vm1557_vm1, %v4400_v36 }
 0x1c9   : > { %3744 = vmatprep.mubr.msk.f32.mxu1 %vm1557_vm1, %v4404_v37 }
 0x1cc   : > { %3745 = vmatmul.mubr.msk.f32.gmra.mrb[4].mxu1 %vm1557_vm1, %v4408_v38 }
 0x1cd   : > { %3747 = vmatprep.mubr.msk.f32.mxu1 %vm1557_vm1, %v4412_v39 }
 0x1d0   : > { %3748 = vmatmul.mubr.msk.f32.gmra.mrb[6].mxu1 %vm1557_vm1, %v2324_v51 }
 0x1d1   : > { %3754 = vmatprep.mubr.msk.f32.mxu1 %vm1557_vm1, %v4360_v23 }
 0x1d4   : > { %3755 = vmatmul.mubr.msk.f32.vlgmr.msra.gmra.mrb[0].mxu1 %vm1557_vm1, %v4364_v24 }
 0x1d5   : > { %3829 = vmatpush3.bf16.msra.mxu1 %v3826_v50  ;;  %3757 = vmatprep.mubr.msk.f32.mxu1 %vm1557_vm1, %v4368_v25 }
 0x1d6   : > { %3831 = vmatprep.subr.bf16.mxu1 %v3830_v54 }
 0x1d8   : > { %3758 = vmatmul.mubr.msk.f32.gmra.mrb[2].mxu1 %vm1557_vm1, %v4372_v26 }
 0x1d9   : > { %3760 = vmatprep.mubr.msk.f32.mxu1 %vm1557_vm1, %v4376_v27 }
 0x1dc   : > { %3761 = vmatmul.mubr.msk.f32.gmra.mrb[4].mxu1 %vm1557_vm1, %v4380_v29 }
 0x1dd   : > { %3763 = vmatprep.mubr.msk.f32.mxu1 %vm1557_vm1, %v2028_v43 }
 0x1e0   : > { %3764 = vmatmul.mubr.msk.f32.gmra.mrb[6].mxu1 %vm1557_vm1, %v2473_v55 }
 0x1e1   : > { %3770 = vmatprep.mubr.msk.f32.mxu1 %vm1557_vm1, %v4326_v10 }
 0x1e4   : > { %3771 = vmatmul.mubr.msk.f32.vlgmr.msra.gmra.mrb[0].mxu1 %vm1557_vm1, %v4331_v13 }
 0x1e5   : > { %3833 = vmatpush3.bf16.msra.mxu1 %v3830_v54  ;;  %3773 = vmatprep.mubr.msk.f32.mxu1 %vm1557_vm1, %v4336_v14 }
 0x1e8   : > { %3774 = vmatmul.mubr.msk.f32.gmra.mrb[2].mxu1 %vm1557_vm1, %v4340_v15 }
 0x1e9   : > { %3776 = vmatprep.mubr.msk.f32.mxu1 %vm1557_vm1, %v4344_v16 }
 0x1ec   : > { %3777 = vmatmul.mubr.msk.f32.gmra.mrb[4].mxu1 %vm1557_vm1, %v4348_v18 }
 0x1ed   : > { %3779 = vmatprep.mubr.msk.f32.mxu1 %vm1557_vm1, %v2176_v47 }
 0x1f0   : > { %3780 = vmatmul.mubr.msk.f32.gmra.mrb[6].mxu1 %vm1557_vm1, %v2621_v56 }
 0x1f1   : > { %3786 = vmatprep.mubr.msk.f32.mxu1 %vm1557_vm1, %v4392_v34 }
 0x1f4   : > { %3787 = vmatmul.mubr.msk.f32.vlgmr.msra.gmra.mrb[0].mxu1 %vm1557_vm1, %v4396_v35 }
 0x1f5   : > { %3789 = vmatprep.mubr.msk.f32.mxu1 %vm1557_vm1, %v4400_v36 }
 0x1f8   : > { %3790 = vmatmul.mubr.msk.f32.gmra.mrb[2].mxu1 %vm1557_vm1, %v4404_v37 }
 0x1f9   : > { %3792 = vmatprep.mubr.msk.f32.mxu1 %vm1557_vm1, %v4408_v38 }
 0x1fc   : > { %3793 = vmatmul.mubr.msk.f32.gmra.mrb[4].mxu1 %vm1557_vm1, %v4412_v39 }
 0x1fd   : > { %3795 = vmatprep.mubr.msk.f32.mxu1 %vm1557_vm1, %v2324_v51 }
 0x200   : > { %3796 = vmatmul.mubr.msk.f32.gmra.mrb[6].mxu1 %vm1557_vm1, %v2769_v57 }
 0x2c7   : > { %v3788_v59 = vpop.f32.mrb[0].mxu1 }
 0x2c8   : > { %v2918_v60 = vadd.f32 %v3788_v59, %v3329_v58  ;;  %v2863_v61 = vpop.f32.mrb[1].mxu1 }
 0x2c9   : > { %v2917_v62 = vadd.f32 %v3329_v58, %v2863_v61 }
 0x2ca   : > { %3975 = vtanh.f32 %v2918_v60 }
 0x2cb   : > { %3977 = vtanh.f32 %v2917_v62  ;;  %v3791_v63 = vpop.f32.mrb[2].mxu1 }
 0x2cc   : > { %v2920_v0 = vadd.f32 %v3791_v63, %v3329_v58  ;;  %v2873_v1 = vpop.f32.mrb[3].mxu1 }
 0x2cd   : > { %v2919_v2 = vadd.f32 %v3329_v58, %v2873_v1 }
 0x2ce   : > { %3979 = vtanh.f32 %v2920_v0 }
 0x2cf   : > { %3981 = vtanh.f32 %v2919_v2  ;;  %v3794_v3 = vpop.f32.mrb[4].mxu1 }
 0x2d0   : > { %v2922_v4 = vadd.f32 %v3794_v3, %v3329_v58  ;;  %v2883_v5 = vpop.f32.mrb[5].mxu1 }
 0x2d1   : > { %v2921_v6 = vadd.f32 %v3329_v58, %v2883_v5 }
 0x2d2   : > { %3983 = vtanh.f32 %v2922_v4 }
 0x2d3   : > { %3985 = vtanh.f32 %v2921_v6  ;;  %v3797_v7 = vpop.f32.mrb[6].mxu1 }
 0x2d4   : > { %v3976_v8 = vpop.eup %3975  ;;  %v2924_v9 = vadd.f32 %v3797_v7, %v3329_v58  ;;  %v2893_v10 = vpop.f32.mrb[7].mxu1 }
 0x2d5   : > { %v3978_v11 = vpop.eup %3977  ;;  %2935 = vst.msk [vmem:[%s4532_s14 + $0x20] sm:$0xff] %vm2933_vm4, %v3976_v8  ;;  %v2923_v12 = vadd.f32 %v3329_v58, %v2893_v10  ;;  %2985 = vrot.lane.b32.xlu1 %v3976_v8, %s4000_s19  ;;  %2952 = vrot.lane.b32.xlu0 %v3976_v8, %s4001_s15 }
 0x2d6   : > { %2934 = vst.msk [vmem:[%s4532_s14] sm:$0xff] %vm2933_vm4, %v3978_v11  ;;  %3987 = vtanh.f32 %v2924_v9 }
 0x2d7   : > { %3989 = vtanh.f32 %v2923_v12 }
 0x2d8   : > { %v3980_v13 = vpop.eup %3979 }
 0x2d9   : > { %v3982_v14 = vpop.eup %3981  ;;  %2937 = vst.msk [vmem:[%s4532_s14 + $0x60] sm:$0xff] %vm2933_vm4, %v3980_v13  ;;  %3018 = vrot.lane.b32.xlu1 %v3976_v8, %s4002_s16  ;;  %2950 = vrot.lane.b32.xlu0 %v3978_v11, %s4001_s15 }
 0x2da   : > { %2936 = vst.msk [vmem:[%s4532_s14 + $0x40] sm:$0xff] %vm2933_vm4, %v3982_v14 }
 0x2dc   : > { %v3984_v15 = vpop.eup %3983 }
 0x2dd   : > { %v3986_v16 = vpop.eup %3985  ;;  %2939 = vst.msk [vmem:[%s4532_s14 + $0xa0] sm:$0xff] %vm2933_vm4, %v3984_v15  ;;  %2983 = vrot.lane.b32.xlu0 %v3978_v11, %s4000_s19  ;;  %2956 = vrot.lane.b32.xlu1 %v3980_v13, %s4001_s15 }
 0x2de   : > { %2938 = vst.msk [vmem:[%s4532_s14 + $0x80] sm:$0xff] %vm2933_vm4, %v3986_v16 }
 0x2e0   : > { %v3988_v17 = vpop.eup %3987 }
 0x2e1   : > { %v3990_v18 = vpop.eup %3989  ;;  %2941 = vst.msk [vmem:[%s4532_s14 + $0xe0] sm:$0xff] %vm2933_vm4, %v3988_v17  ;;  %3016 = vrot.lane.b32.xlu0 %v3978_v11, %s4002_s16  ;;  %2989 = vrot.lane.b32.xlu1 %v3980_v13, %s4000_s19 }
 0x2e2   : > { %2940 = vst.msk [vmem:[%s4532_s14 + $0xc0] sm:$0xff] %vm2933_vm4, %v3990_v18 }
 0x2e5   : > { %3022 = vrot.lane.b32.xlu1 %v3980_v13, %s4002_s16  ;;  %2987 = vrot.lane.b32.xlu0 %v3982_v14, %s4000_s19 }
 0x2e9   : > { %3020 = vrot.lane.b32.xlu0 %v3982_v14, %s4002_s16  ;;  %2954 = vrot.lane.b32.xlu1 %v3982_v14, %s4001_s15 }
 0x2ed   : > { %2960 = vrot.lane.b32.xlu1 %v3984_v15, %s4001_s15  ;;  %2958 = vrot.lane.b32.xlu0 %v3986_v16, %s4001_s15 }
 0x2f1   : > { %2993 = vrot.lane.b32.xlu1 %v3984_v15, %s4000_s19  ;;  %2991 = vrot.lane.b32.xlu0 %v3986_v16, %s4000_s19 }
 0x2f5   : > { %3026 = vrot.lane.b32.xlu1 %v3984_v15, %s4002_s16  ;;  %3024 = vrot.lane.b32.xlu0 %v3986_v16, %s4002_s16 }
 0x2f9   : > { %2964 = vrot.lane.b32.xlu1 %v3988_v17, %s4001_s15  ;;  %2962 = vrot.lane.b32.xlu0 %v3990_v18, %s4001_s15 }
 0x2fd   : > { %2997 = vrot.lane.b32.xlu1 %v3988_v17, %s4000_s19  ;;  %2995 = vrot.lane.b32.xlu0 %v3990_v18, %s4000_s19 }
 0x301   : > { %3030 = vrot.lane.b32.xlu1 %v3988_v17, %s4002_s16  ;;  %3028 = vrot.lane.b32.xlu0 %v3990_v18, %s4002_s16 }
 0x347   : > { %v2986_v19 = vpop.permute.xlu1 %2985  ;;  %v2953_v20 = vpop.permute.xlu0 %2952 }
 0x348   : > { %3339 = vst.msk [vmem:[%s4532_s14 + $0x30] sm:$0xff] %vm2933_vm4, %v2986_v19  ;;  %3331 = vst.msk [vmem:[%s4532_s14 + $0x28] sm:$0xff] %vm2933_vm4, %v2953_v20 }
 0x34b   : > { %v3019_v21 = vpop.permute.xlu1 %3018  ;;  %v2951_v22 = vpop.permute.xlu0 %2950 }
 0x34c   : > { %3347 = vst.msk [vmem:[%s4532_s14 + $0x38] sm:$0xff] %vm2933_vm4, %v3019_v21  ;;  %3330 = vst.msk [vmem:[%s4532_s14 + $0x8] sm:$0xff] %vm2933_vm4, %v2951_v22 }
 0x34f   : > { %v2984_v23 = vpop.permute.xlu0 %2983  ;;  %v2957_v24 = vpop.permute.xlu1 %2956 }
 0x350   : > { %3338 = vst.msk [vmem:[%s4532_s14 + $0x10] sm:$0xff] %vm2933_vm4, %v2984_v23  ;;  %3333 = vst.msk [vmem:[%s4532_s14 + $0x68] sm:$0xff] %vm2933_vm4, %v2957_v24 }
 0x353   : > { %v3017_v25 = vpop.permute.xlu0 %3016  ;;  %v2990_v26 = vpop.permute.xlu1 %2989 }
 0x354   : > { %3346 = vst.msk [vmem:[%s4532_s14 + $0x18] sm:$0xff] %vm2933_vm4, %v3017_v25  ;;  %3341 = vst.msk [vmem:[%s4532_s14 + $0x70] sm:$0xff] %vm2933_vm4, %v2990_v26 }
 0x357   : > { %v3023_v27 = vpop.permute.xlu1 %3022  ;;  %v2988_v28 = vpop.permute.xlu0 %2987 }
 0x358   : > { %3349 = vst.msk [vmem:[%s4532_s14 + $0x78] sm:$0xff] %vm2933_vm4, %v3023_v27  ;;  %3340 = vst.msk [vmem:[%s4532_s14 + $0x50] sm:$0xff] %vm2933_vm4, %v2988_v28 }
 0x35b   : > { %v3021_v29 = vpop.permute.xlu0 %3020  ;;  %v2955_v30 = vpop.permute.xlu1 %2954 }
 0x35c   : > { %3348 = vst.msk [vmem:[%s4532_s14 + $0x58] sm:$0xff] %vm2933_vm4, %v3021_v29  ;;  %3332 = vst.msk [vmem:[%s4532_s14 + $0x48] sm:$0xff] %vm2933_vm4, %v2955_v30 }
 0x35f   : > { %v2961_v31 = vpop.permute.xlu1 %2960  ;;  %v2959_v32 = vpop.permute.xlu0 %2958 }
 0x360   : > { %3335 = vst.msk [vmem:[%s4532_s14 + $0xa8] sm:$0xff] %vm2933_vm4, %v2961_v31  ;;  %3334 = vst.msk [vmem:[%s4532_s14 + $0x88] sm:$0xff] %vm2933_vm4, %v2959_v32 }
 0x363   : > { %v2994_v33 = vpop.permute.xlu1 %2993  ;;  %v2992_v34 = vpop.permute.xlu0 %2991 }
 0x364   : > { %3343 = vst.msk [vmem:[%s4532_s14 + $0xb0] sm:$0xff] %vm2933_vm4, %v2994_v33  ;;  %3342 = vst.msk [vmem:[%s4532_s14 + $0x90] sm:$0xff] %vm2933_vm4, %v2992_v34 }
 0x367   : > { %v3027_v35 = vpop.permute.xlu1 %3026  ;;  %v3025_v36 = vpop.permute.xlu0 %3024 }
 0x368   : > { %3351 = vst.msk [vmem:[%s4532_s14 + $0xb8] sm:$0xff] %vm2933_vm4, %v3027_v35  ;;  %3350 = vst.msk [vmem:[%s4532_s14 + $0x98] sm:$0xff] %vm2933_vm4, %v3025_v36 }
 0x36b   : > { %v2965_v37 = vpop.permute.xlu1 %2964  ;;  %v2963_v38 = vpop.permute.xlu0 %2962 }
 0x36c   : > { %3337 = vst.msk [vmem:[%s4532_s14 + $0xe8] sm:$0xff] %vm2933_vm4, %v2965_v37  ;;  %3336 = vst.msk [vmem:[%s4532_s14 + $0xc8] sm:$0xff] %vm2933_vm4, %v2963_v38 }
 0x36f   : > { %v2998_v39 = vpop.permute.xlu1 %2997  ;;  %v2996_v40 = vpop.permute.xlu0 %2995 }
 0x370   : > { %3345 = vst.msk [vmem:[%s4532_s14 + $0xf0] sm:$0xff] %vm2933_vm4, %v2998_v39  ;;  %3344 = vst.msk [vmem:[%s4532_s14 + $0xd0] sm:$0xff] %vm2933_vm4, %v2996_v40 }
 0x373   : > { %v3031_v41 = vpop.permute.xlu1 %3030  ;;  %v3029_v42 = vpop.permute.xlu0 %3028 }
 0x374   : > { %3353 = vst.msk [vmem:[%s4532_s14 + $0xf8] sm:$0xff] %vm2933_vm4, %v3031_v41  ;;  %3352 = vst.msk [vmem:[%s4532_s14 + $0xd8] sm:$0xff] %vm2933_vm4, %v3029_v42 }
 0x375 PF: > { %s15_s18 = sadd.s32 1, %s3997_s18  }
 0x376   : > { %p12_p4 = scmp.ge.s32.totalorder %s15_s18, 4  }
 0x378   :  { %14 = sbr.rel (!%p12_p4) target bundleno = 1 (0x1), region = 94 }

</bundles_post_ra>
